<compile_context>
chip_gen: v5e
topology: v5e:2x2
jax: 0.10.0
libtpu: 0.0.40
codegen_flags: <defaults>
</compile_context>

<pallas_src>
import functools

import jax
import jax.numpy as jnp
from jax.experimental import pallas as pl
from jax.experimental.pallas import tpu as pltpu


# Row indices of the packed per-layer (15, D) bias/LayerNorm slab.
(_SA_BQ, _SA_BK, _SA_BV, _SA_BO, _N1_W, _N1_B,
 _CA_BQ, _CA_BK, _CA_BV, _CA_BO, _N2_W, _N2_B,
 _FF_B2, _N3_W, _N3_B) = range(15)

_STACKED_KEYS = ("sa_wqk", "sa_wv", "sa_wo",
                 "ca_wq", "ca_wk", "ca_wv", "ca_wo",
                 "ff_w1", "ff_b1", "ff_w2", "vecs")


# ---------------------------------------------------------------------------
# In-kernel helpers
# ---------------------------------------------------------------------------
def _layernorm(x, g, b, eps=1e-5):
    mu = jnp.mean(x, axis=-1, keepdims=True)
    xc = x - mu
    var = jnp.mean(xc * xc, axis=-1, keepdims=True)
    return xc * jax.lax.rsqrt(var + eps) * g + b


def _mha(q3, k3, v3, nhead, scale, batched_heads):
    """Multi-head attention. q3: (B, Lq, D), k3/v3: (B, Lk, D) -> (B, Lq, D)."""
    B, Lq, D = q3.shape
    Lk = k3.shape[1]
    Dh = D // nhead
    q3 = q3 * scale                                    # scale q (cheaper than scaling scores)

    if batched_heads:
        # Single (B, H)-batched dot_general per stage (no per-head lane slices).
        q4 = q3.reshape(B, Lq, nhead, Dh).astype(jnp.bfloat16)
        k4 = k3.reshape(B, Lk, nhead, Dh).astype(jnp.bfloat16)
        v4 = v3.reshape(B, Lk, nhead, Dh).astype(jnp.bfloat16)
        s = jnp.einsum("bqhd,bkhd->bhqk", q4, k4,
                       preferred_element_type=jnp.float32)
        s = s - jnp.max(s, axis=-1, keepdims=True)
        p = jnp.exp(s)
        p = p * pl.reciprocal(jnp.sum(p, axis=-1, keepdims=True), approx=True)
        o = jnp.einsum("bhqk,bkhd->bqhd", p.astype(jnp.bfloat16), v4,
                       preferred_element_type=jnp.float32)
        return o.reshape(B, Lq, D)

    # Fallback: per-head static unroll (known-good lowering path).
    outs = []
    for h in range(nhead):
        lo, hi = h * Dh, (h + 1) * Dh
        qh = q3[:, :, lo:hi].astype(jnp.bfloat16)
        kh = k3[:, :, lo:hi].astype(jnp.bfloat16)
        vh = v3[:, :, lo:hi].astype(jnp.bfloat16)
        s = jnp.einsum("bqd,bkd->bqk", qh, kh, preferred_element_type=jnp.float32)
        s = s - jnp.max(s, axis=-1, keepdims=True)
        p = jnp.exp(s)
        p = p * pl.reciprocal(jnp.sum(p, axis=-1, keepdims=True), approx=True)
        outs.append(jnp.einsum("bqk,bkd->bqd", p.astype(jnp.bfloat16), vh,
                               preferred_element_type=jnp.float32))
    return jnp.concatenate(outs, axis=-1)


# ---------------------------------------------------------------------------
# Fused decoder kernel: grid = (batch_tile, layer); one step == one layer
# ---------------------------------------------------------------------------
def _decoder_kernel(
    # layer-invariant inputs (per batch tile)
    tgt_ref, qpos_ref, mem_ref, memk_ref, fn_ref,
    # per-layer stacked weights (leading layer dim squeezed by BlockSpec)
    sa_wqk_ref, sa_wv_ref, sa_wo_ref,
    ca_wq_ref, ca_wk_ref, ca_wv_ref, ca_wo_ref,
    ff_w1_ref, ff_b1_ref, ff_w2_ref, vec_ref,
    # output
    out_ref,
    # scratch: residual stream carried across layers (persists across grid steps)
    x_carry,
    *, nhead, return_intermediate, batched_heads):
    layer = pl.program_id(1)
    n_layers = pl.num_programs(1)

    @pl.when(layer == 0)
    def _():
        x_carry[...] = tgt_ref[...]

    B, S, D = x_carry.shape
    Dh = D // nhead
    scale = 1.0 / float(Dh) ** 0.5

    vecs = vec_ref[...]                                # (15, D) f32

    def vrow(i):                                       # (1, D) broadcastable row
        return vecs[i:i + 1, :]

    x2 = x_carry[...].reshape(B * S, D)                # residual stream, f32
    qpos2 = qpos_ref[...].reshape(B * S, D)            # f32
    M = mem_ref.shape[1]
    mem2 = mem_ref[...].reshape(B * M, D)              # bf16
    memk2 = memk_ref[...].reshape(B * M, D)            # bf16, memory + pos (hoisted)

    def matmul(inp2d, w_ref):                          # bf16 MXU, f32 accumulation
        return jnp.dot(inp2d.astype(jnp.bfloat16), w_ref[...],
                       preferred_element_type=jnp.float32)

    # ----- self-attention: q = k = x + query_pos, v = x (fused QK projection)
    qk = matmul(x2 + qpos2, sa_wqk_ref)                # (B*S, 2D)
    q = (qk[:, :D] + vrow(_SA_BQ)).reshape(B, S, D)
    k = (qk[:, D:] + vrow(_SA_BK)).reshape(B, S, D)
    v = (matmul(x2, sa_wv_ref) + vrow(_SA_BV)).reshape(B, S, D)
    a = _mha(q, k, v, nhead, scale, batched_heads).reshape(B * S, D)
    a = matmul(a, sa_wo_ref) + vrow(_SA_BO)
    x2 = _layernorm(x2 + a, vrow(_N1_W), vrow(_N1_B))

    # ----- cross-attention: q = x + query_pos, k = memory + pos, v = memory
    q = (matmul(x2 + qpos2, ca_wq_ref) + vrow(_CA_BQ)).reshape(B, S, D)
    k = (matmul(memk2, ca_wk_ref) + vrow(_CA_BK)).reshape(B, M, D)
    v = (matmul(mem2, ca_wv_ref) + vrow(_CA_BV)).reshape(B, M, D)
    # TODO(synk): tile over M with online softmax for DETR-sized memory on v7x.
    a = _mha(q, k, v, nhead, scale, batched_heads).reshape(B * S, D)
    a = matmul(a, ca_wo_ref) + vrow(_CA_BO)
    x2 = _layernorm(x2 + a, vrow(_N2_W), vrow(_N2_B))

    # ----- feed-forward: linear1 -> ReLU -> linear2, add + LN
    h = jnp.maximum(matmul(x2, ff_w1_ref) + ff_b1_ref[...], 0.0)
    f = matmul(h, ff_w2_ref) + vrow(_FF_B2)
    x2 = _layernorm(x2 + f, vrow(_N3_W), vrow(_N3_B))

    x_carry[...] = x2.reshape(B, S, D)

    def _write_out():
        out_ref[...] = _layernorm(x2, fn_ref[0:1, :],
                                  fn_ref[1:2, :]).reshape(B, S, D)

    if return_intermediate:
        _write_out()                                   # norm(layer_i output) per layer
    else:
        pl.when(layer == n_layers - 1)(_write_out)     # only the final layer writes


# ---------------------------------------------------------------------------
# Parameter packing: big matrices in bf16, all (D,)-sized vectors in one slab
# ---------------------------------------------------------------------------
def _pack_layer_params(layers):
    def one(p):
        sa, ca = p["self_attn"], p["cross_attn"]
        wq, wk, wv = jnp.split(sa["in_proj_w"], 3, axis=0)     # (D, D), (out,in)
        bq, bk, bv = jnp.split(sa["in_proj_b"], 3)
        cwq, cwk, cwv = jnp.split(ca["in_proj_w"], 3, axis=0)
        cbq, cbk, cbv = jnp.split(ca["in_proj_b"], 3)
        bf = lambda w: w.T.astype(jnp.bfloat16)                # (in, out), bf16
        vecs = jnp.stack([bq, bk, bv, sa["out_proj_b"],
                          p["norm1_w"], p["norm1_b"],
                          cbq, cbk, cbv, ca["out_proj_b"],
                          p["norm2_w"], p["norm2_b"],
                          p["lin2_b"], p["norm3_w"], p["norm3_b"]]
                         ).astype(jnp.float32)                 # (15, D)
        return {
            "sa_wqk": jnp.concatenate([bf(wq), bf(wk)], axis=1),   # (D, 2D)
            "sa_wv": bf(wv), "sa_wo": bf(sa["out_proj_w"]),
            "ca_wq": bf(cwq), "ca_wk": bf(cwk), "ca_wv": bf(cwv),
            "ca_wo": bf(ca["out_proj_w"]),
            "ff_w1": bf(p["lin1_w"]),
            "ff_b1": p["lin1_b"].reshape(1, -1).astype(jnp.float32),
            "ff_w2": bf(p["lin2_w"]),
            "vecs": vecs,
        }

    per = [one(p) for p in layers]
    return {k: jnp.stack([d[k] for d in per]) for k in _STACKED_KEYS}


# ---------------------------------------------------------------------------
# Forward (matches TransformerDecoder.forward semantics)
# ---------------------------------------------------------------------------
@functools.partial(jax.jit,
                   static_argnames=("nhead", "return_intermediate", "batched_heads"))
def _forward(tgt, memory, params, query_pos, pos, *, nhead,
             return_intermediate, batched_heads):
    S, B, D = tgt.shape
    L = len(params["layers"])

    x = tgt.transpose(1, 0, 2)                          # (B, S, D) f32
    qp = query_pos.transpose(1, 0, 2)                   # (B, S, D) f32
    mem = memory.transpose(1, 0, 2)                     # (B, M, D)
    memk = mem + pos.transpose(1, 0, 2)                 # memory + pos, hoisted out of the layer loop
    mem = mem.astype(jnp.bfloat16)
    memk = memk.astype(jnp.bfloat16)

    packed = _pack_layer_params(params["layers"])
    fn = jnp.stack([params["norm_w"], params["norm_b"]]).astype(jnp.float32)  # (2, D)

    # Batch tiling: 2 tiles when possible so megacore chips (v7x) use both cores.
    bt = B // 2 if (B >= 2 and B % 2 == 0) else B
    nbt = B // bt

    const_args = (x, qp, mem, memk, fn)
    layer_args = tuple(packed[k] for k in _STACKED_KEYS)

    def batched_const_spec(a):
        return pl.BlockSpec((bt,) + a.shape[1:], lambda b, l: (b, 0, 0))

    def stacked_spec(a):
        nz = a.ndim - 1
        return pl.BlockSpec((None,) + a.shape[1:],
                            lambda b, l, _nz=nz: (l,) + (0,) * _nz)

    in_specs = ([batched_const_spec(a) for a in (x, qp, mem, memk)]
                + [pl.BlockSpec(fn.shape, lambda b, l: (0, 0))]
                + [stacked_spec(a) for a in layer_args])

    if return_intermediate:
        out_shape = jax.ShapeDtypeStruct((L, B, S, D), jnp.float32)
        out_spec = pl.BlockSpec((None, bt, S, D), lambda b, l: (l, b, 0, 0))
    else:
        out_shape = jax.ShapeDtypeStruct((1, B, S, D), jnp.float32)
        out_spec = pl.BlockSpec((None, bt, S, D), lambda b, l: (0, b, 0, 0))

    out = pl.pallas_call(
        functools.partial(_decoder_kernel, nhead=nhead,
                          return_intermediate=return_intermediate,
                          batched_heads=batched_heads),
        out_shape=out_shape,
        grid=(nbt, L),
        in_specs=in_specs,
        out_specs=out_spec,
        scratch_shapes=[pltpu.VMEM((bt, S, D), jnp.float32)],
        compiler_params=pltpu.CompilerParams(
            dimension_semantics=("parallel", "arbitrary"),   # batch parallel, layer carries state
            vmem_limit_bytes=64 * 1024 * 1024),              # re-derive for real DETR shapes
    )(*const_args, *layer_args)

    return out.transpose(0, 2, 1, 3)                     # (L or 1, S, B, D)


def transformer_decoder(tgt, memory, params, nhead,
                        query_pos=None, pos=None, return_intermediate=False):
    """tgt: (S, B, D), memory: (M, B, D) -> (num_layers or 1, S, B, D)."""
    if query_pos is None:
        query_pos = jnp.zeros_like(tgt)
    if pos is None:
        pos = jnp.zeros_like(memory)
    try:
        out = _forward(tgt, memory, params, query_pos, pos, nhead=nhead,
                       return_intermediate=return_intermediate, batched_heads=True)
        return jax.block_until_ready(out)
    except Exception:
        # Fallback if this Mosaic build cannot lower the (B, H)-batched
        # dot_general attention: per-head unrolled attention (same math).
        return _forward(tgt, memory, params, query_pos, pos, nhead=nhead,
                        return_intermediate=return_intermediate, batched_heads=False)


# ---------------------------------------------------------------------------
# Deterministic parameter construction (PyTorch-style layouts)
# ---------------------------------------------------------------------------
def init_params(key, num_layers, d_model, dim_ff):
    def mha_params(k):
        k1, k2 = jax.random.split(k)
        return {
            "in_proj_w": 0.02 * jax.random.normal(k1, (3 * d_model, d_model), jnp.float32),
            "in_proj_b": jnp.zeros((3 * d_model,), jnp.float32),
            "out_proj_w": 0.02 * jax.random.normal(k2, (d_model, d_model), jnp.float32),
            "out_proj_b": jnp.zeros((d_model,), jnp.float32),
        }

    layers = []
    for _ in range(num_layers):
        key, k1, k2, k3, k4 = jax.random.split(key, 5)
        layers.append({
            "self_attn": mha_params(k1),
            "cross_attn": mha_params(k2),
            "lin1_w": 0.02 * jax.random.normal(k3, (dim_ff, d_model), jnp.float32),
            "lin1_b": jnp.zeros((dim_ff,), jnp.float32),
            "lin2_w": 0.02 * jax.random.normal(k4, (d_model, dim_ff), jnp.float32),
            "lin2_b": jnp.zeros((d_model,), jnp.float32),
            "norm1_w": jnp.ones((d_model,), jnp.float32),
            "norm1_b": jnp.zeros((d_model,), jnp.float32),
            "norm2_w": jnp.ones((d_model,), jnp.float32),
            "norm2_b": jnp.zeros((d_model,), jnp.float32),
            "norm3_w": jnp.ones((d_model,), jnp.float32),
            "norm3_b": jnp.zeros((d_model,), jnp.float32),
        })
    return {
        "layers": layers,
        "norm_w": jnp.ones((d_model,), jnp.float32),
        "norm_b": jnp.zeros((d_model,), jnp.float32),
    }


# ---------------------------------------------------------------------------
if __name__ == "__main__":
    num_layers = 2
    d_model = 32
    nhead = 4
    dim_ff = 64
    S, M, B = 8, 16, 2      # num queries, memory length, batch

    root = jax.random.PRNGKey(0)
    kp, km, kq, kpos = jax.random.split(root, 4)

    params = init_params(kp, num_layers, d_model, dim_ff)

    tgt = jnp.zeros((S, B, d_model), jnp.float32)                # DETR: tgt starts at 0
    memory = jax.random.normal(km, (M, B, d_model), jnp.float32)
    query_pos = jax.random.normal(kq, (S, B, d_model), jnp.float32)
    pos = jax.random.normal(kpos, (M, B, d_model), jnp.float32)

    out = transformer_decoder(tgt, memory, params, nhead,
                              query_pos=query_pos, pos=pos,
                              return_intermediate=False)
    out = jax.block_until_ready(out)
    assert out.shape == (1, S, B, d_model), out.shape
    assert bool(jnp.all(jnp.isfinite(out)))
    print("KERNEL_OK")
</pallas_src>

<mosaic_0001>
module attributes {stable_mosaic.version = 11 : i64} {
  func.func @_decoder_kernel(%arg0: i32, %arg1: i32, %arg2: memref<1x8x32xf32, #tpu.memory_space<vmem>>, %arg3: memref<1x8x32xf32, #tpu.memory_space<vmem>>, %arg4: memref<1x16x32xbf16, #tpu.memory_space<vmem>>, %arg5: memref<1x16x32xbf16, #tpu.memory_space<vmem>>, %arg6: memref<2x32xf32, #tpu.memory_space<vmem>>, %arg7: memref<1x32x64xbf16, #tpu.memory_space<vmem>>, %arg8: memref<1x32x32xbf16, #tpu.memory_space<vmem>>, %arg9: memref<1x32x32xbf16, #tpu.memory_space<vmem>>, %arg10: memref<1x32x32xbf16, #tpu.memory_space<vmem>>, %arg11: memref<1x32x32xbf16, #tpu.memory_space<vmem>>, %arg12: memref<1x32x32xbf16, #tpu.memory_space<vmem>>, %arg13: memref<1x32x32xbf16, #tpu.memory_space<vmem>>, %arg14: memref<1x32x64xbf16, #tpu.memory_space<vmem>>, %arg15: memref<1x1x64xf32, #tpu.memory_space<vmem>>, %arg16: memref<1x64x32xbf16, #tpu.memory_space<vmem>>, %arg17: memref<1x15x32xf32, #tpu.memory_space<vmem>>, %arg18: memref<1x1x8x32xf32, #tpu.memory_space<vmem>>, %arg19: memref<1x8x32xf32, #tpu.memory_space<vmem>>) attributes {dimension_semantics = [#tpu.dimension_semantics<parallel>, #tpu.dimension_semantics<arbitrary>], iteration_bounds = array<i64: 2, 2>, scalar_prefetch = 0 : i64, scratch_operands = 1 : i64, tpu.core_type = #tpu.core_type<tc>, window_params = [{transform_indices = @transform_0, window_bounds = array<i64: 1, 8, 32>}, {transform_indices = @transform_1, window_bounds = array<i64: 1, 8, 32>}, {transform_indices = @transform_2, window_bounds = array<i64: 1, 16, 32>}, {transform_indices = @transform_3, window_bounds = array<i64: 1, 16, 32>}, {pipeline_mode = #tpu.pipeline_mode<synchronous>, transform_indices = @transform_4, window_bounds = array<i64: 2, 32>}, {transform_indices = @transform_5, window_bounds = array<i64: 1, 32, 64>}, {transform_indices = @transform_6, window_bounds = array<i64: 1, 32, 32>}, {transform_indices = @transform_7, window_bounds = array<i64: 1, 32, 32>}, {transform_indices = @transform_8, window_bounds = array<i64: 1, 32, 32>}, {transform_indices = @transform_9, window_bounds = array<i64: 1, 32, 32>}, {transform_indices = @transform_10, window_bounds = array<i64: 1, 32, 32>}, {transform_indices = @transform_11, window_bounds = array<i64: 1, 32, 32>}, {transform_indices = @transform_12, window_bounds = array<i64: 1, 32, 64>}, {transform_indices = @transform_13, window_bounds = array<i64: 1, 1, 64>}, {transform_indices = @transform_14, window_bounds = array<i64: 1, 64, 32>}, {transform_indices = @transform_15, window_bounds = array<i64: 1, 15, 32>}, {transform_indices = @transform_16, window_bounds = array<i64: 1, 1, 8, 32>}]} {
    %c0_i32 = arith.constant 0 : i32
    %0 = arith.cmpi eq, %arg1, %c0_i32 : i32
    %1 = arith.extui %0 : i1 to i32
    %c0_i32_0 = arith.constant 0 : i32
    %2 = arith.cmpi ne, %1, %c0_i32_0 : i32
    scf.if %2 {
      %c0_107 = arith.constant 0 : index
      %c0_108 = arith.constant 0 : index
      %c0_109 = arith.constant 0 : index
      %324 = vector.load %arg2[%c0_107, %c0_108, %c0_109] : memref<1x8x32xf32, #tpu.memory_space<vmem>>, vector<1x8x32xf32>
      %c0_110 = arith.constant 0 : index
      %c0_111 = arith.constant 0 : index
      %c0_112 = arith.constant 0 : index
      %325 = vector.load %arg19[%c0_110, %c0_111, %c0_112] : memref<1x8x32xf32, #tpu.memory_space<vmem>>, vector<1x8x32xf32>
      tpu.vector_store %arg19[%c0_110, %c0_111, %c0_112], %324 {strides = array<i32>} : memref<1x8x32xf32, #tpu.memory_space<vmem>>, vector<1x8x32xf32>,
    } else {
    }
    %c0 = arith.constant 0 : index
    %c0_1 = arith.constant 0 : index
    %c0_2 = arith.constant 0 : index
    %3 = vector.load %arg17[%c0, %c0_1, %c0_2] : memref<1x15x32xf32, #tpu.memory_space<vmem>>, vector<1x15x32xf32>
    %4 = vector.shape_cast %3 : vector<1x15x32xf32> to vector<15x32xf32>
    %c0_3 = arith.constant 0 : index
    %c0_4 = arith.constant 0 : index
    %c0_5 = arith.constant 0 : index
    %5 = vector.load %arg19[%c0_3, %c0_4, %c0_5] : memref<1x8x32xf32, #tpu.memory_space<vmem>>, vector<1x8x32xf32>
    %6 = vector.shape_cast %5 : vector<1x8x32xf32> to vector<8x32xf32>
    %c0_6 = arith.constant 0 : index
    %c0_7 = arith.constant 0 : index
    %c0_8 = arith.constant 0 : index
    %7 = vector.load %arg3[%c0_6, %c0_7, %c0_8] : memref<1x8x32xf32, #tpu.memory_space<vmem>>, vector<1x8x32xf32>
    %8 = vector.shape_cast %7 : vector<1x8x32xf32> to vector<8x32xf32>
    %c0_9 = arith.constant 0 : index
    %c0_10 = arith.constant 0 : index
    %c0_11 = arith.constant 0 : index
    %9 = vector.load %arg4[%c0_9, %c0_10, %c0_11] : memref<1x16x32xbf16, #tpu.memory_space<vmem>>, vector<1x16x32xbf16>
    %10 = vector.shape_cast %9 : vector<1x16x32xbf16> to vector<16x32xbf16>
    %c0_12 = arith.constant 0 : index
    %c0_13 = arith.constant 0 : index
    %c0_14 = arith.constant 0 : index
    %11 = vector.load %arg5[%c0_12, %c0_13, %c0_14] : memref<1x16x32xbf16, #tpu.memory_space<vmem>>, vector<1x16x32xbf16>
    %12 = vector.shape_cast %11 : vector<1x16x32xbf16> to vector<16x32xbf16>
    %13 = arith.addf %6, %8 : vector<8x32xf32>
    %14 = arith.truncf %13 : vector<8x32xf32> to vector<8x32xbf16>
    %c0_15 = arith.constant 0 : index
    %c0_16 = arith.constant 0 : index
    %c0_17 = arith.constant 0 : index
    %15 = vector.load %arg7[%c0_15, %c0_16, %c0_17] : memref<1x32x64xbf16, #tpu.memory_space<vmem>>, vector<1x32x64xbf16>
    %16 = vector.shape_cast %15 : vector<1x32x64xbf16> to vector<32x64xbf16>
    %cst = arith.constant dense<0.000000e+00> : vector<8x64xf32>
    %17 = tpu.matmul %14, %16, %cst {dimension_numbers = #tpu.dot_dimension_numbers<[1], [0], [0], [1], [0, 0, 1, 1], [], []>} : vector<8x32xbf16>, vector<32x64xbf16>, vector<8x64xf32> -> vector<8x64xf32>
    %18 = vector.extract_strided_slice %17 {offsets = [0, 0], sizes = [8, 32], strides = [1, 1]} : vector<8x64xf32> to vector<8x32xf32>
    %19 = vector.extract_strided_slice %4 {offsets = [0, 0], sizes = [1, 32], strides = [1, 1]} : vector<15x32xf32> to vector<1x32xf32>
    %20 = vector.broadcast %19 : vector<1x32xf32> to vector<8x32xf32>
    %21 = arith.addf %18, %20 : vector<8x32xf32>
    %22 = vector.shape_cast %21 : vector<8x32xf32> to vector<1x8x32xf32>
    %23 = vector.extract_strided_slice %17 {offsets = [0, 32], sizes = [8, 32], strides = [1, 1]} : vector<8x64xf32> to vector<8x32xf32>
    %24 = vector.extract_strided_slice %4 {offsets = [1, 0], sizes = [1, 32], strides = [1, 1]} : vector<15x32xf32> to vector<1x32xf32>
    %25 = vector.broadcast %24 : vector<1x32xf32> to vector<8x32xf32>
    %26 = arith.addf %23, %25 : vector<8x32xf32>
    %27 = vector.shape_cast %26 : vector<8x32xf32> to vector<1x8x32xf32>
    %28 = arith.truncf %6 : vector<8x32xf32> to vector<8x32xbf16>
    %c0_18 = arith.constant 0 : index
    %c0_19 = arith.constant 0 : index
    %c0_20 = arith.constant 0 : index
    %29 = vector.load %arg8[%c0_18, %c0_19, %c0_20] : memref<1x32x32xbf16, #tpu.memory_space<vmem>>, vector<1x32x32xbf16>
    %30 = vector.shape_cast %29 : vector<1x32x32xbf16> to vector<32x32xbf16>
    %cst_21 = arith.constant dense<0.000000e+00> : vector<8x32xf32>
    %31 = tpu.matmul %28, %30, %cst_21 {dimension_numbers = #tpu.dot_dimension_numbers<[1], [0], [0], [1], [0, 0, 1, 1], [], []>} : vector<8x32xbf16>, vector<32x32xbf16>, vector<8x32xf32> -> vector<8x32xf32>
    %32 = vector.extract_strided_slice %4 {offsets = [2, 0], sizes = [1, 32], strides = [1, 1]} : vector<15x32xf32> to vector<1x32xf32>
    %33 = vector.broadcast %32 : vector<1x32xf32> to vector<8x32xf32>
    %34 = arith.addf %31, %33 : vector<8x32xf32>
    %35 = vector.shape_cast %34 : vector<8x32xf32> to vector<1x8x32xf32>
    %cst_22 = arith.constant 0.353553385 : f32
    %36 = vector.broadcast %cst_22 : f32 to vector<1x8x32xf32>
    %37 = arith.mulf %22, %36 : vector<1x8x32xf32>
    %38 = vector.extract_strided_slice %37 {offsets = [0, 0, 0], sizes = [1, 8, 8], strides = [1, 1, 1]} : vector<1x8x32xf32> to vector<1x8x8xf32>
    %39 = arith.truncf %38 : vector<1x8x8xf32> to vector<1x8x8xbf16>
    %40 = vector.extract_strided_slice %27 {offsets = [0, 0, 0], sizes = [1, 8, 8], strides = [1, 1, 1]} : vector<1x8x32xf32> to vector<1x8x8xf32>
    %41 = arith.truncf %40 : vector<1x8x8xf32> to vector<1x8x8xbf16>
    %42 = vector.extract_strided_slice %35 {offsets = [0, 0, 0], sizes = [1, 8, 8], strides = [1, 1, 1]} : vector<1x8x32xf32> to vector<1x8x8xf32>
    %43 = arith.truncf %42 : vector<1x8x8xf32> to vector<1x8x8xbf16>
    "tpu.trace_start"() <{level = 10 : i32, message = "bqd,bkd->bqk"}> : () -> ()
    %cst_23 = arith.constant dense<0.000000e+00> : vector<1x8x8xf32>
    %44 = tpu.matmul %39, %41, %cst_23 {dimension_numbers = #tpu.dot_dimension_numbers<[2], [2], [1], [1], [0, 0, 0, 1, 1, 1], [0], [0]>} : vector<1x8x8xbf16>, vector<1x8x8xbf16>, vector<1x8x8xf32> -> vector<1x8x8xf32>
    "tpu.trace_stop"() : () -> ()
    %cst_24 = arith.constant dense<0xFF800000> : vector<1x8xf32>
    %45 = vector.multi_reduction <maximumf>, %44, %cst_24 [2] : vector<1x8x8xf32> to vector<1x8xf32>
    %46 = vector.shape_cast %45 : vector<1x8xf32> to vector<1x8x1xf32>
    %47 = vector.broadcast %46 : vector<1x8x1xf32> to vector<1x8x8xf32>
    %48 = arith.subf %44, %47 : vector<1x8x8xf32>
    %49 = math.exp %48 : vector<1x8x8xf32>
    %cst_25 = arith.constant dense<0.000000e+00> : vector<1x8xf32>
    %50 = vector.multi_reduction <add>, %49, %cst_25 [2] : vector<1x8x8xf32> to vector<1x8xf32>
    %51 = vector.shape_cast %50 : vector<1x8xf32> to vector<1x8x1xf32>
    %52 = tpu.reciprocal %51 {approx = true} : vector<1x8x1xf32> -> vector<1x8x1xf32>
    %53 = vector.broadcast %52 : vector<1x8x1xf32> to vector<1x8x8xf32>
    %54 = arith.mulf %49, %53 : vector<1x8x8xf32>
    %55 = arith.truncf %54 : vector<1x8x8xf32> to vector<1x8x8xbf16>
    "tpu.trace_start"() <{level = 10 : i32, message = "bqk,bkd->bqd"}> : () -> ()
    %cst_26 = arith.constant dense<0.000000e+00> : vector<1x8x8xf32>
    %56 = tpu.matmul %55, %43, %cst_26 {dimension_numbers = #tpu.dot_dimension_numbers<[2], [1], [1], [2], [0, 0, 0, 1, 1, 2], [0], [0]>} : vector<1x8x8xbf16>, vector<1x8x8xbf16>, vector<1x8x8xf32> -> vector<1x8x8xf32>
    "tpu.trace_stop"() : () -> ()
    %57 = vector.extract_strided_slice %37 {offsets = [0, 0, 8], sizes = [1, 8, 8], strides = [1, 1, 1]} : vector<1x8x32xf32> to vector<1x8x8xf32>
    %58 = arith.truncf %57 : vector<1x8x8xf32> to vector<1x8x8xbf16>
    %59 = vector.extract_strided_slice %27 {offsets = [0, 0, 8], sizes = [1, 8, 8], strides = [1, 1, 1]} : vector<1x8x32xf32> to vector<1x8x8xf32>
    %60 = arith.truncf %59 : vector<1x8x8xf32> to vector<1x8x8xbf16>
    %61 = vector.extract_strided_slice %35 {offsets = [0, 0, 8], sizes = [1, 8, 8], strides = [1, 1, 1]} : vector<1x8x32xf32> to vector<1x8x8xf32>
    %62 = arith.truncf %61 : vector<1x8x8xf32> to vector<1x8x8xbf16>
    "tpu.trace_start"() <{level = 10 : i32, message = "bqd,bkd->bqk"}> : () -> ()
    %cst_27 = arith.constant dense<0.000000e+00> : vector<1x8x8xf32>
    %63 = tpu.matmul %58, %60, %cst_27 {dimension_numbers = #tpu.dot_dimension_numbers<[2], [2], [1], [1], [0, 0, 0, 1, 1, 1], [0], [0]>} : vector<1x8x8xbf16>, vector<1x8x8xbf16>, vector<1x8x8xf32> -> vector<1x8x8xf32>
    "tpu.trace_stop"() : () -> ()
    %cst_28 = arith.constant dense<0xFF800000> : vector<1x8xf32>
    %64 = vector.multi_reduction <maximumf>, %63, %cst_28 [2] : vector<1x8x8xf32> to vector<1x8xf32>
    %65 = vector.shape_cast %64 : vector<1x8xf32> to vector<1x8x1xf32>
    %66 = vector.broadcast %65 : vector<1x8x1xf32> to vector<1x8x8xf32>
    %67 = arith.subf %63, %66 : vector<1x8x8xf32>
    %68 = math.exp %67 : vector<1x8x8xf32>
    %cst_29 = arith.constant dense<0.000000e+00> : vector<1x8xf32>
    %69 = vector.multi_reduction <add>, %68, %cst_29 [2] : vector<1x8x8xf32> to vector<1x8xf32>
    %70 = vector.shape_cast %69 : vector<1x8xf32> to vector<1x8x1xf32>
    %71 = tpu.reciprocal %70 {approx = true} : vector<1x8x1xf32> -> vector<1x8x1xf32>
    %72 = vector.broadcast %71 : vector<1x8x1xf32> to vector<1x8x8xf32>
    %73 = arith.mulf %68, %72 : vector<1x8x8xf32>
    %74 = arith.truncf %73 : vector<1x8x8xf32> to vector<1x8x8xbf16>
    "tpu.trace_start"() <{level = 10 : i32, message = "bqk,bkd->bqd"}> : () -> ()
    %cst_30 = arith.constant dense<0.000000e+00> : vector<1x8x8xf32>
    %75 = tpu.matmul %74, %62, %cst_30 {dimension_numbers = #tpu.dot_dimension_numbers<[2], [1], [1], [2], [0, 0, 0, 1, 1, 2], [0], [0]>} : vector<1x8x8xbf16>, vector<1x8x8xbf16>, vector<1x8x8xf32> -> vector<1x8x8xf32>
    "tpu.trace_stop"() : () -> ()
    %76 = vector.extract_strided_slice %37 {offsets = [0, 0, 16], sizes = [1, 8, 8], strides = [1, 1, 1]} : vector<1x8x32xf32> to vector<1x8x8xf32>
    %77 = arith.truncf %76 : vector<1x8x8xf32> to vector<1x8x8xbf16>
    %78 = vector.extract_strided_slice %27 {offsets = [0, 0, 16], sizes = [1, 8, 8], strides = [1, 1, 1]} : vector<1x8x32xf32> to vector<1x8x8xf32>
    %79 = arith.truncf %78 : vector<1x8x8xf32> to vector<1x8x8xbf16>
    %80 = vector.extract_strided_slice %35 {offsets = [0, 0, 16], sizes = [1, 8, 8], strides = [1, 1, 1]} : vector<1x8x32xf32> to vector<1x8x8xf32>
    %81 = arith.truncf %80 : vector<1x8x8xf32> to vector<1x8x8xbf16>
    "tpu.trace_start"() <{level = 10 : i32, message = "bqd,bkd->bqk"}> : () -> ()
    %cst_31 = arith.constant dense<0.000000e+00> : vector<1x8x8xf32>
    %82 = tpu.matmul %77, %79, %cst_31 {dimension_numbers = #tpu.dot_dimension_numbers<[2], [2], [1], [1], [0, 0, 0, 1, 1, 1], [0], [0]>} : vector<1x8x8xbf16>, vector<1x8x8xbf16>, vector<1x8x8xf32> -> vector<1x8x8xf32>
    "tpu.trace_stop"() : () -> ()
    %cst_32 = arith.constant dense<0xFF800000> : vector<1x8xf32>
    %83 = vector.multi_reduction <maximumf>, %82, %cst_32 [2] : vector<1x8x8xf32> to vector<1x8xf32>
    %84 = vector.shape_cast %83 : vector<1x8xf32> to vector<1x8x1xf32>
    %85 = vector.broadcast %84 : vector<1x8x1xf32> to vector<1x8x8xf32>
    %86 = arith.subf %82, %85 : vector<1x8x8xf32>
    %87 = math.exp %86 : vector<1x8x8xf32>
    %cst_33 = arith.constant dense<0.000000e+00> : vector<1x8xf32>
    %88 = vector.multi_reduction <add>, %87, %cst_33 [2] : vector<1x8x8xf32> to vector<1x8xf32>
    %89 = vector.shape_cast %88 : vector<1x8xf32> to vector<1x8x1xf32>
    %90 = tpu.reciprocal %89 {approx = true} : vector<1x8x1xf32> -> vector<1x8x1xf32>
    %91 = vector.broadcast %90 : vector<1x8x1xf32> to vector<1x8x8xf32>
    %92 = arith.mulf %87, %91 : vector<1x8x8xf32>
    %93 = arith.truncf %92 : vector<1x8x8xf32> to vector<1x8x8xbf16>
    "tpu.trace_start"() <{level = 10 : i32, message = "bqk,bkd->bqd"}> : () -> ()
    %cst_34 = arith.constant dense<0.000000e+00> : vector<1x8x8xf32>
    %94 = tpu.matmul %93, %81, %cst_34 {dimension_numbers = #tpu.dot_dimension_numbers<[2], [1], [1], [2], [0, 0, 0, 1, 1, 2], [0], [0]>} : vector<1x8x8xbf16>, vector<1x8x8xbf16>, vector<1x8x8xf32> -> vector<1x8x8xf32>
    "tpu.trace_stop"() : () -> ()
    %95 = vector.extract_strided_slice %37 {offsets = [0, 0, 24], sizes = [1, 8, 8], strides = [1, 1, 1]} : vector<1x8x32xf32> to vector<1x8x8xf32>
    %96 = arith.truncf %95 : vector<1x8x8xf32> to vector<1x8x8xbf16>
    %97 = vector.extract_strided_slice %27 {offsets = [0, 0, 24], sizes = [1, 8, 8], strides = [1, 1, 1]} : vector<1x8x32xf32> to vector<1x8x8xf32>
    %98 = arith.truncf %97 : vector<1x8x8xf32> to vector<1x8x8xbf16>
    %99 = vector.extract_strided_slice %35 {offsets = [0, 0, 24], sizes = [1, 8, 8], strides = [1, 1, 1]} : vector<1x8x32xf32> to vector<1x8x8xf32>
    %100 = arith.truncf %99 : vector<1x8x8xf32> to vector<1x8x8xbf16>
    "tpu.trace_start"() <{level = 10 : i32, message = "bqd,bkd->bqk"}> : () -> ()
    %cst_35 = arith.constant dense<0.000000e+00> : vector<1x8x8xf32>
    %101 = tpu.matmul %96, %98, %cst_35 {dimension_numbers = #tpu.dot_dimension_numbers<[2], [2], [1], [1], [0, 0, 0, 1, 1, 1], [0], [0]>} : vector<1x8x8xbf16>, vector<1x8x8xbf16>, vector<1x8x8xf32> -> vector<1x8x8xf32>
    "tpu.trace_stop"() : () -> ()
    %cst_36 = arith.constant dense<0xFF800000> : vector<1x8xf32>
    %102 = vector.multi_reduction <maximumf>, %101, %cst_36 [2] : vector<1x8x8xf32> to vector<1x8xf32>
    %103 = vector.shape_cast %102 : vector<1x8xf32> to vector<1x8x1xf32>
    %104 = vector.broadcast %103 : vector<1x8x1xf32> to vector<1x8x8xf32>
    %105 = arith.subf %101, %104 : vector<1x8x8xf32>
    %106 = math.exp %105 : vector<1x8x8xf32>
    %cst_37 = arith.constant dense<0.000000e+00> : vector<1x8xf32>
    %107 = vector.multi_reduction <add>, %106, %cst_37 [2] : vector<1x8x8xf32> to vector<1x8xf32>
    %108 = vector.shape_cast %107 : vector<1x8xf32> to vector<1x8x1xf32>
    %109 = tpu.reciprocal %108 {approx = true} : vector<1x8x1xf32> -> vector<1x8x1xf32>
    %110 = vector.broadcast %109 : vector<1x8x1xf32> to vector<1x8x8xf32>
    %111 = arith.mulf %106, %110 : vector<1x8x8xf32>
    %112 = arith.truncf %111 : vector<1x8x8xf32> to vector<1x8x8xbf16>
    "tpu.trace_start"() <{level = 10 : i32, message = "bqk,bkd->bqd"}> : () -> ()
    %cst_38 = arith.constant dense<0.000000e+00> : vector<1x8x8xf32>
    %113 = tpu.matmul %112, %100, %cst_38 {dimension_numbers = #tpu.dot_dimension_numbers<[2], [1], [1], [2], [0, 0, 0, 1, 1, 2], [0], [0]>} : vector<1x8x8xbf16>, vector<1x8x8xbf16>, vector<1x8x8xf32> -> vector<1x8x8xf32>
    "tpu.trace_stop"() : () -> ()
    %114 = tpu.concatenate %56, %75, %94, %113 in 2 : vector<1x8x8xf32>, vector<1x8x8xf32>, vector<1x8x8xf32>, vector<1x8x8xf32> -> vector<1x8x32xf32>
    %115 = vector.shape_cast %114 : vector<1x8x32xf32> to vector<8x32xf32>
    %116 = arith.truncf %115 : vector<8x32xf32> to vector<8x32xbf16>
    %c0_39 = arith.constant 0 : index
    %c0_40 = arith.constant 0 : index
    %c0_41 = arith.constant 0 : index
    %117 = vector.load %arg9[%c0_39, %c0_40, %c0_41] : memref<1x32x32xbf16, #tpu.memory_space<vmem>>, vector<1x32x32xbf16>
    %118 = vector.shape_cast %117 : vector<1x32x32xbf16> to vector<32x32xbf16>
    %cst_42 = arith.constant dense<0.000000e+00> : vector<8x32xf32>
    %119 = tpu.matmul %116, %118, %cst_42 {dimension_numbers = #tpu.dot_dimension_numbers<[1], [0], [0], [1], [0, 0, 1, 1], [], []>} : vector<8x32xbf16>, vector<32x32xbf16>, vector<8x32xf32> -> vector<8x32xf32>
    %120 = vector.extract_strided_slice %4 {offsets = [3, 0], sizes = [1, 32], strides = [1, 1]} : vector<15x32xf32> to vector<1x32xf32>
    %121 = vector.broadcast %120 : vector<1x32xf32> to vector<8x32xf32>
    %122 = arith.addf %119, %121 : vector<8x32xf32>
    %123 = arith.addf %6, %122 : vector<8x32xf32>
    %124 = vector.extract_strided_slice %4 {offsets = [4, 0], sizes = [1, 32], strides = [1, 1]} : vector<15x32xf32> to vector<1x32xf32>
    %125 = vector.extract_strided_slice %4 {offsets = [5, 0], sizes = [1, 32], strides = [1, 1]} : vector<15x32xf32> to vector<1x32xf32>
    %cst_43 = arith.constant dense<0.000000e+00> : vector<8xf32>
    %126 = vector.multi_reduction <add>, %123, %cst_43 [1] : vector<8x32xf32> to vector<8xf32>
    %127 = vector.shape_cast %126 : vector<8xf32> to vector<8x1xf32>
    %cst_44 = arith.constant 3.200000e+01 : f32
    %128 = vector.broadcast %cst_44 : f32 to vector<8x1xf32>
    %129 = arith.divf %127, %128 : vector<8x1xf32>
    %130 = vector.broadcast %129 : vector<8x1xf32> to vector<8x32xf32>
    %131 = arith.subf %123, %130 : vector<8x32xf32>
    %132 = arith.mulf %131, %131 : vector<8x32xf32>
    %cst_45 = arith.constant dense<0.000000e+00> : vector<8xf32>
    %133 = vector.multi_reduction <add>, %132, %cst_45 [1] : vector<8x32xf32> to vector<8xf32>
    %134 = vector.shape_cast %133 : vector<8xf32> to vector<8x1xf32>
    %cst_46 = arith.constant 3.200000e+01 : f32
    %135 = vector.broadcast %cst_46 : f32 to vector<8x1xf32>
    %136 = arith.divf %134, %135 : vector<8x1xf32>
    %cst_47 = arith.constant 9.99999974E-6 : f32
    %137 = vector.broadcast %cst_47 : f32 to vector<8x1xf32>
    %138 = arith.addf %136, %137 : vector<8x1xf32>
    %139 = math.rsqrt %138 : vector<8x1xf32>
    %140 = vector.broadcast %139 : vector<8x1xf32> to vector<8x32xf32>
    %141 = arith.mulf %131, %140 : vector<8x32xf32>
    %142 = vector.broadcast %124 : vector<1x32xf32> to vector<8x32xf32>
    %143 = arith.mulf %141, %142 : vector<8x32xf32>
    %144 = vector.broadcast %125 : vector<1x32xf32> to vector<8x32xf32>
    %145 = arith.addf %143, %144 : vector<8x32xf32>
    %146 = arith.addf %145, %8 : vector<8x32xf32>
    %147 = arith.truncf %146 : vector<8x32xf32> to vector<8x32xbf16>
    %c0_48 = arith.constant 0 : index
    %c0_49 = arith.constant 0 : index
    %c0_50 = arith.constant 0 : index
    %148 = vector.load %arg10[%c0_48, %c0_49, %c0_50] : memref<1x32x32xbf16, #tpu.memory_space<vmem>>, vector<1x32x32xbf16>
    %149 = vector.shape_cast %148 : vector<1x32x32xbf16> to vector<32x32xbf16>
    %cst_51 = arith.constant dense<0.000000e+00> : vector<8x32xf32>
    %150 = tpu.matmul %147, %149, %cst_51 {dimension_numbers = #tpu.dot_dimension_numbers<[1], [0], [0], [1], [0, 0, 1, 1], [], []>} : vector<8x32xbf16>, vector<32x32xbf16>, vector<8x32xf32> -> vector<8x32xf32>
    %151 = vector.extract_strided_slice %4 {offsets = [6, 0], sizes = [1, 32], strides = [1, 1]} : vector<15x32xf32> to vector<1x32xf32>
    %152 = vector.broadcast %151 : vector<1x32xf32> to vector<8x32xf32>
    %153 = arith.addf %150, %152 : vector<8x32xf32>
    %154 = vector.shape_cast %153 : vector<8x32xf32> to vector<1x8x32xf32>
    %c0_52 = arith.constant 0 : index
    %c0_53 = arith.constant 0 : index
    %c0_54 = arith.constant 0 : index
    %155 = vector.load %arg11[%c0_52, %c0_53, %c0_54] : memref<1x32x32xbf16, #tpu.memory_space<vmem>>, vector<1x32x32xbf16>
    %156 = vector.shape_cast %155 : vector<1x32x32xbf16> to vector<32x32xbf16>
    %cst_55 = arith.constant dense<0.000000e+00> : vector<16x32xf32>
    %157 = tpu.matmul %12, %156, %cst_55 {dimension_numbers = #tpu.dot_dimension_numbers<[1], [0], [0], [1], [0, 0, 1, 1], [], []>} : vector<16x32xbf16>, vector<32x32xbf16>, vector<16x32xf32> -> vector<16x32xf32>
    %158 = vector.extract_strided_slice %4 {offsets = [7, 0], sizes = [1, 32], strides = [1, 1]} : vector<15x32xf32> to vector<1x32xf32>
    %159 = vector.broadcast %158 : vector<1x32xf32> to vector<16x32xf32>
    %160 = arith.addf %157, %159 : vector<16x32xf32>
    %161 = vector.shape_cast %160 : vector<16x32xf32> to vector<1x16x32xf32>
    %c0_56 = arith.constant 0 : index
    %c0_57 = arith.constant 0 : index
    %c0_58 = arith.constant 0 : index
    %162 = vector.load %arg12[%c0_56, %c0_57, %c0_58] : memref<1x32x32xbf16, #tpu.memory_space<vmem>>, vector<1x32x32xbf16>
    %163 = vector.shape_cast %162 : vector<1x32x32xbf16> to vector<32x32xbf16>
    %cst_59 = arith.constant dense<0.000000e+00> : vector<16x32xf32>
    %164 = tpu.matmul %10, %163, %cst_59 {dimension_numbers = #tpu.dot_dimension_numbers<[1], [0], [0], [1], [0, 0, 1, 1], [], []>} : vector<16x32xbf16>, vector<32x32xbf16>, vector<16x32xf32> -> vector<16x32xf32>
    %165 = vector.extract_strided_slice %4 {offsets = [8, 0], sizes = [1, 32], strides = [1, 1]} : vector<15x32xf32> to vector<1x32xf32>
    %166 = vector.broadcast %165 : vector<1x32xf32> to vector<16x32xf32>
    %167 = arith.addf %164, %166 : vector<16x32xf32>
    %168 = vector.shape_cast %167 : vector<16x32xf32> to vector<1x16x32xf32>
    %cst_60 = arith.constant 0.353553385 : f32
    %169 = vector.broadcast %cst_60 : f32 to vector<1x8x32xf32>
    %170 = arith.mulf %154, %169 : vector<1x8x32xf32>
    %171 = vector.extract_strided_slice %170 {offsets = [0, 0, 0], sizes = [1, 8, 8], strides = [1, 1, 1]} : vector<1x8x32xf32> to vector<1x8x8xf32>
    %172 = arith.truncf %171 : vector<1x8x8xf32> to vector<1x8x8xbf16>
    %173 = vector.extract_strided_slice %161 {offsets = [0, 0, 0], sizes = [1, 16, 8], strides = [1, 1, 1]} : vector<1x16x32xf32> to vector<1x16x8xf32>
    %174 = arith.truncf %173 : vector<1x16x8xf32> to vector<1x16x8xbf16>
    %175 = vector.extract_strided_slice %168 {offsets = [0, 0, 0], sizes = [1, 16, 8], strides = [1, 1, 1]} : vector<1x16x32xf32> to vector<1x16x8xf32>
    %176 = arith.truncf %175 : vector<1x16x8xf32> to vector<1x16x8xbf16>
    "tpu.trace_start"() <{level = 10 : i32, message = "bqd,bkd->bqk"}> : () -> ()
    %cst_61 = arith.constant dense<0.000000e+00> : vector<1x8x16xf32>
    %177 = tpu.matmul %172, %174, %cst_61 {dimension_numbers = #tpu.dot_dimension_numbers<[2], [2], [1], [1], [0, 0, 0, 1, 1, 1], [0], [0]>} : vector<1x8x8xbf16>, vector<1x16x8xbf16>, vector<1x8x16xf32> -> vector<1x8x16xf32>
    "tpu.trace_stop"() : () -> ()
    %cst_62 = arith.constant dense<0xFF800000> : vector<1x8xf32>
    %178 = vector.multi_reduction <maximumf>, %177, %cst_62 [2] : vector<1x8x16xf32> to vector<1x8xf32>
    %179 = vector.shape_cast %178 : vector<1x8xf32> to vector<1x8x1xf32>
    %180 = vector.broadcast %179 : vector<1x8x1xf32> to vector<1x8x16xf32>
    %181 = arith.subf %177, %180 : vector<1x8x16xf32>
    %182 = math.exp %181 : vector<1x8x16xf32>
    %cst_63 = arith.constant dense<0.000000e+00> : vector<1x8xf32>
    %183 = vector.multi_reduction <add>, %182, %cst_63 [2] : vector<1x8x16xf32> to vector<1x8xf32>
    %184 = vector.shape_cast %183 : vector<1x8xf32> to vector<1x8x1xf32>
    %185 = tpu.reciprocal %184 {approx = true} : vector<1x8x1xf32> -> vector<1x8x1xf32>
    %186 = vector.broadcast %185 : vector<1x8x1xf32> to vector<1x8x16xf32>
    %187 = arith.mulf %182, %186 : vector<1x8x16xf32>
    %188 = arith.truncf %187 : vector<1x8x16xf32> to vector<1x8x16xbf16>
    "tpu.trace_start"() <{level = 10 : i32, message = "bqk,bkd->bqd"}> : () -> ()
    %cst_64 = arith.constant dense<0.000000e+00> : vector<1x8x8xf32>
    %189 = tpu.matmul %188, %176, %cst_64 {dimension_numbers = #tpu.dot_dimension_numbers<[2], [1], [1], [2], [0, 0, 0, 1, 1, 2], [0], [0]>} : vector<1x8x16xbf16>, vector<1x16x8xbf16>, vector<1x8x8xf32> -> vector<1x8x8xf32>
    "tpu.trace_stop"() : () -> ()
    %190 = vector.extract_strided_slice %170 {offsets = [0, 0, 8], sizes = [1, 8, 8], strides = [1, 1, 1]} : vector<1x8x32xf32> to vector<1x8x8xf32>
    %191 = arith.truncf %190 : vector<1x8x8xf32> to vector<1x8x8xbf16>
    %192 = vector.extract_strided_slice %161 {offsets = [0, 0, 8], sizes = [1, 16, 8], strides = [1, 1, 1]} : vector<1x16x32xf32> to vector<1x16x8xf32>
    %193 = arith.truncf %192 : vector<1x16x8xf32> to vector<1x16x8xbf16>
    %194 = vector.extract_strided_slice %168 {offsets = [0, 0, 8], sizes = [1, 16, 8], strides = [1, 1, 1]} : vector<1x16x32xf32> to vector<1x16x8xf32>
    %195 = arith.truncf %194 : vector<1x16x8xf32> to vector<1x16x8xbf16>
    "tpu.trace_start"() <{level = 10 : i32, message = "bqd,bkd->bqk"}> : () -> ()
    %cst_65 = arith.constant dense<0.000000e+00> : vector<1x8x16xf32>
    %196 = tpu.matmul %191, %193, %cst_65 {dimension_numbers = #tpu.dot_dimension_numbers<[2], [2], [1], [1], [0, 0, 0, 1, 1, 1], [0], [0]>} : vector<1x8x8xbf16>, vector<1x16x8xbf16>, vector<1x8x16xf32> -> vector<1x8x16xf32>
    "tpu.trace_stop"() : () -> ()
    %cst_66 = arith.constant dense<0xFF800000> : vector<1x8xf32>
    %197 = vector.multi_reduction <maximumf>, %196, %cst_66 [2] : vector<1x8x16xf32> to vector<1x8xf32>
    %198 = vector.shape_cast %197 : vector<1x8xf32> to vector<1x8x1xf32>
    %199 = vector.broadcast %198 : vector<1x8x1xf32> to vector<1x8x16xf32>
    %200 = arith.subf %196, %199 : vector<1x8x16xf32>
    %201 = math.exp %200 : vector<1x8x16xf32>
    %cst_67 = arith.constant dense<0.000000e+00> : vector<1x8xf32>
    %202 = vector.multi_reduction <add>, %201, %cst_67 [2] : vector<1x8x16xf32> to vector<1x8xf32>
    %203 = vector.shape_cast %202 : vector<1x8xf32> to vector<1x8x1xf32>
    %204 = tpu.reciprocal %203 {approx = true} : vector<1x8x1xf32> -> vector<1x8x1xf32>
    %205 = vector.broadcast %204 : vector<1x8x1xf32> to vector<1x8x16xf32>
    %206 = arith.mulf %201, %205 : vector<1x8x16xf32>
    %207 = arith.truncf %206 : vector<1x8x16xf32> to vector<1x8x16xbf16>
    "tpu.trace_start"() <{level = 10 : i32, message = "bqk,bkd->bqd"}> : () -> ()
    %cst_68 = arith.constant dense<0.000000e+00> : vector<1x8x8xf32>
    %208 = tpu.matmul %207, %195, %cst_68 {dimension_numbers = #tpu.dot_dimension_numbers<[2], [1], [1], [2], [0, 0, 0, 1, 1, 2], [0], [0]>} : vector<1x8x16xbf16>, vector<1x16x8xbf16>, vector<1x8x8xf32> -> vector<1x8x8xf32>
    "tpu.trace_stop"() : () -> ()
    %209 = vector.extract_strided_slice %170 {offsets = [0, 0, 16], sizes = [1, 8, 8], strides = [1, 1, 1]} : vector<1x8x32xf32> to vector<1x8x8xf32>
    %210 = arith.truncf %209 : vector<1x8x8xf32> to vector<1x8x8xbf16>
    %211 = vector.extract_strided_slice %161 {offsets = [0, 0, 16], sizes = [1, 16, 8], strides = [1, 1, 1]} : vector<1x16x32xf32> to vector<1x16x8xf32>
    %212 = arith.truncf %211 : vector<1x16x8xf32> to vector<1x16x8xbf16>
    %213 = vector.extract_strided_slice %168 {offsets = [0, 0, 16], sizes = [1, 16, 8], strides = [1, 1, 1]} : vector<1x16x32xf32> to vector<1x16x8xf32>
    %214 = arith.truncf %213 : vector<1x16x8xf32> to vector<1x16x8xbf16>
    "tpu.trace_start"() <{level = 10 : i32, message = "bqd,bkd->bqk"}> : () -> ()
    %cst_69 = arith.constant dense<0.000000e+00> : vector<1x8x16xf32>
    %215 = tpu.matmul %210, %212, %cst_69 {dimension_numbers = #tpu.dot_dimension_numbers<[2], [2], [1], [1], [0, 0, 0, 1, 1, 1], [0], [0]>} : vector<1x8x8xbf16>, vector<1x16x8xbf16>, vector<1x8x16xf32> -> vector<1x8x16xf32>
    "tpu.trace_stop"() : () -> ()
    %cst_70 = arith.constant dense<0xFF800000> : vector<1x8xf32>
    %216 = vector.multi_reduction <maximumf>, %215, %cst_70 [2] : vector<1x8x16xf32> to vector<1x8xf32>
    %217 = vector.shape_cast %216 : vector<1x8xf32> to vector<1x8x1xf32>
    %218 = vector.broadcast %217 : vector<1x8x1xf32> to vector<1x8x16xf32>
    %219 = arith.subf %215, %218 : vector<1x8x16xf32>
    %220 = math.exp %219 : vector<1x8x16xf32>
    %cst_71 = arith.constant dense<0.000000e+00> : vector<1x8xf32>
    %221 = vector.multi_reduction <add>, %220, %cst_71 [2] : vector<1x8x16xf32> to vector<1x8xf32>
    %222 = vector.shape_cast %221 : vector<1x8xf32> to vector<1x8x1xf32>
    %223 = tpu.reciprocal %222 {approx = true} : vector<1x8x1xf32> -> vector<1x8x1xf32>
    %224 = vector.broadcast %223 : vector<1x8x1xf32> to vector<1x8x16xf32>
    %225 = arith.mulf %220, %224 : vector<1x8x16xf32>
    %226 = arith.truncf %225 : vector<1x8x16xf32> to vector<1x8x16xbf16>
    "tpu.trace_start"() <{level = 10 : i32, message = "bqk,bkd->bqd"}> : () -> ()
    %cst_72 = arith.constant dense<0.000000e+00> : vector<1x8x8xf32>
    %227 = tpu.matmul %226, %214, %cst_72 {dimension_numbers = #tpu.dot_dimension_numbers<[2], [1], [1], [2], [0, 0, 0, 1, 1, 2], [0], [0]>} : vector<1x8x16xbf16>, vector<1x16x8xbf16>, vector<1x8x8xf32> -> vector<1x8x8xf32>
    "tpu.trace_stop"() : () -> ()
    %228 = vector.extract_strided_slice %170 {offsets = [0, 0, 24], sizes = [1, 8, 8], strides = [1, 1, 1]} : vector<1x8x32xf32> to vector<1x8x8xf32>
    %229 = arith.truncf %228 : vector<1x8x8xf32> to vector<1x8x8xbf16>
    %230 = vector.extract_strided_slice %161 {offsets = [0, 0, 24], sizes = [1, 16, 8], strides = [1, 1, 1]} : vector<1x16x32xf32> to vector<1x16x8xf32>
    %231 = arith.truncf %230 : vector<1x16x8xf32> to vector<1x16x8xbf16>
    %232 = vector.extract_strided_slice %168 {offsets = [0, 0, 24], sizes = [1, 16, 8], strides = [1, 1, 1]} : vector<1x16x32xf32> to vector<1x16x8xf32>
    %233 = arith.truncf %232 : vector<1x16x8xf32> to vector<1x16x8xbf16>
    "tpu.trace_start"() <{level = 10 : i32, message = "bqd,bkd->bqk"}> : () -> ()
    %cst_73 = arith.constant dense<0.000000e+00> : vector<1x8x16xf32>
    %234 = tpu.matmul %229, %231, %cst_73 {dimension_numbers = #tpu.dot_dimension_numbers<[2], [2], [1], [1], [0, 0, 0, 1, 1, 1], [0], [0]>} : vector<1x8x8xbf16>, vector<1x16x8xbf16>, vector<1x8x16xf32> -> vector<1x8x16xf32>
    "tpu.trace_stop"() : () -> ()
    %cst_74 = arith.constant dense<0xFF800000> : vector<1x8xf32>
    %235 = vector.multi_reduction <maximumf>, %234, %cst_74 [2] : vector<1x8x16xf32> to vector<1x8xf32>
    %236 = vector.shape_cast %235 : vector<1x8xf32> to vector<1x8x1xf32>
    %237 = vector.broadcast %236 : vector<1x8x1xf32> to vector<1x8x16xf32>
    %238 = arith.subf %234, %237 : vector<1x8x16xf32>
    %239 = math.exp %238 : vector<1x8x16xf32>
    %cst_75 = arith.constant dense<0.000000e+00> : vector<1x8xf32>
    %240 = vector.multi_reduction <add>, %239, %cst_75 [2] : vector<1x8x16xf32> to vector<1x8xf32>
    %241 = vector.shape_cast %240 : vector<1x8xf32> to vector<1x8x1xf32>
    %242 = tpu.reciprocal %241 {approx = true} : vector<1x8x1xf32> -> vector<1x8x1xf32>
    %243 = vector.broadcast %242 : vector<1x8x1xf32> to vector<1x8x16xf32>
    %244 = arith.mulf %239, %243 : vector<1x8x16xf32>
    %245 = arith.truncf %244 : vector<1x8x16xf32> to vector<1x8x16xbf16>
    "tpu.trace_start"() <{level = 10 : i32, message = "bqk,bkd->bqd"}> : () -> ()
    %cst_76 = arith.constant dense<0.000000e+00> : vector<1x8x8xf32>
    %246 = tpu.matmul %245, %233, %cst_76 {dimension_numbers = #tpu.dot_dimension_numbers<[2], [1], [1], [2], [0, 0, 0, 1, 1, 2], [0], [0]>} : vector<1x8x16xbf16>, vector<1x16x8xbf16>, vector<1x8x8xf32> -> vector<1x8x8xf32>
    "tpu.trace_stop"() : () -> ()
    %247 = tpu.concatenate %189, %208, %227, %246 in 2 : vector<1x8x8xf32>, vector<1x8x8xf32>, vector<1x8x8xf32>, vector<1x8x8xf32> -> vector<1x8x32xf32>
    %248 = vector.shape_cast %247 : vector<1x8x32xf32> to vector<8x32xf32>
    %249 = arith.truncf %248 : vector<8x32xf32> to vector<8x32xbf16>
    %c0_77 = arith.constant 0 : index
    %c0_78 = arith.constant 0 : index
    %c0_79 = arith.constant 0 : index
    %250 = vector.load %arg13[%c0_77, %c0_78, %c0_79] : memref<1x32x32xbf16, #tpu.memory_space<vmem>>, vector<1x32x32xbf16>
    %251 = vector.shape_cast %250 : vector<1x32x32xbf16> to vector<32x32xbf16>
    %cst_80 = arith.constant dense<0.000000e+00> : vector<8x32xf32>
    %252 = tpu.matmul %249, %251, %cst_80 {dimension_numbers = #tpu.dot_dimension_numbers<[1], [0], [0], [1], [0, 0, 1, 1], [], []>} : vector<8x32xbf16>, vector<32x32xbf16>, vector<8x32xf32> -> vector<8x32xf32>
    %253 = vector.extract_strided_slice %4 {offsets = [9, 0], sizes = [1, 32], strides = [1, 1]} : vector<15x32xf32> to vector<1x32xf32>
    %254 = vector.broadcast %253 : vector<1x32xf32> to vector<8x32xf32>
    %255 = arith.addf %252, %254 : vector<8x32xf32>
    %256 = arith.addf %145, %255 : vector<8x32xf32>
    %257 = vector.extract_strided_slice %4 {offsets = [10, 0], sizes = [1, 32], strides = [1, 1]} : vector<15x32xf32> to vector<1x32xf32>
    %258 = vector.extract_strided_slice %4 {offsets = [11, 0], sizes = [1, 32], strides = [1, 1]} : vector<15x32xf32> to vector<1x32xf32>
    %cst_81 = arith.constant dense<0.000000e+00> : vector<8xf32>
    %259 = vector.multi_reduction <add>, %256, %cst_81 [1] : vector<8x32xf32> to vector<8xf32>
    %260 = vector.shape_cast %259 : vector<8xf32> to vector<8x1xf32>
    %cst_82 = arith.constant 3.200000e+01 : f32
    %261 = vector.broadcast %cst_82 : f32 to vector<8x1xf32>
    %262 = arith.divf %260, %261 : vector<8x1xf32>
    %263 = vector.broadcast %262 : vector<8x1xf32> to vector<8x32xf32>
    %264 = arith.subf %256, %263 : vector<8x32xf32>
    %265 = arith.mulf %264, %264 : vector<8x32xf32>
    %cst_83 = arith.constant dense<0.000000e+00> : vector<8xf32>
    %266 = vector.multi_reduction <add>, %265, %cst_83 [1] : vector<8x32xf32> to vector<8xf32>
    %267 = vector.shape_cast %266 : vector<8xf32> to vector<8x1xf32>
    %cst_84 = arith.constant 3.200000e+01 : f32
    %268 = vector.broadcast %cst_84 : f32 to vector<8x1xf32>
    %269 = arith.divf %267, %268 : vector<8x1xf32>
    %cst_85 = arith.constant 9.99999974E-6 : f32
    %270 = vector.broadcast %cst_85 : f32 to vector<8x1xf32>
    %271 = arith.addf %269, %270 : vector<8x1xf32>
    %272 = math.rsqrt %271 : vector<8x1xf32>
    %273 = vector.broadcast %272 : vector<8x1xf32> to vector<8x32xf32>
    %274 = arith.mulf %264, %273 : vector<8x32xf32>
    %275 = vector.broadcast %257 : vector<1x32xf32> to vector<8x32xf32>
    %276 = arith.mulf %274, %275 : vector<8x32xf32>
    %277 = vector.broadcast %258 : vector<1x32xf32> to vector<8x32xf32>
    %278 = arith.addf %276, %277 : vector<8x32xf32>
    %279 = arith.truncf %278 : vector<8x32xf32> to vector<8x32xbf16>
    %c0_86 = arith.constant 0 : index
    %c0_87 = arith.constant 0 : index
    %c0_88 = arith.constant 0 : index
    %280 = vector.load %arg14[%c0_86, %c0_87, %c0_88] : memref<1x32x64xbf16, #tpu.memory_space<vmem>>, vector<1x32x64xbf16>
    %281 = vector.shape_cast %280 : vector<1x32x64xbf16> to vector<32x64xbf16>
    %cst_89 = arith.constant dense<0.000000e+00> : vector<8x64xf32>
    %282 = tpu.matmul %279, %281, %cst_89 {dimension_numbers = #tpu.dot_dimension_numbers<[1], [0], [0], [1], [0, 0, 1, 1], [], []>} : vector<8x32xbf16>, vector<32x64xbf16>, vector<8x64xf32> -> vector<8x64xf32>
    %c0_90 = arith.constant 0 : index
    %c0_91 = arith.constant 0 : index
    %c0_92 = arith.constant 0 : index
    %283 = vector.load %arg15[%c0_90, %c0_91, %c0_92] : memref<1x1x64xf32, #tpu.memory_space<vmem>>, vector<1x1x64xf32>
    %284 = vector.shape_cast %283 : vector<1x1x64xf32> to vector<1x64xf32>
    %285 = vector.broadcast %284 : vector<1x64xf32> to vector<8x64xf32>
    %286 = arith.addf %282, %285 : vector<8x64xf32>
    %cst_93 = arith.constant 0.000000e+00 : f32
    %287 = vector.broadcast %cst_93 : f32 to vector<8x64xf32>
    %288 = arith.maximumf %286, %287 : vector<8x64xf32>
    %289 = arith.truncf %288 : vector<8x64xf32> to vector<8x64xbf16>
    %c0_94 = arith.constant 0 : index
    %c0_95 = arith.constant 0 : index
    %c0_96 = arith.constant 0 : index
    %290 = vector.load %arg16[%c0_94, %c0_95, %c0_96] : memref<1x64x32xbf16, #tpu.memory_space<vmem>>, vector<1x64x32xbf16>
    %291 = vector.shape_cast %290 : vector<1x64x32xbf16> to vector<64x32xbf16>
    %cst_97 = arith.constant dense<0.000000e+00> : vector<8x32xf32>
    %292 = tpu.matmul %289, %291, %cst_97 {dimension_numbers = #tpu.dot_dimension_numbers<[1], [0], [0], [1], [0, 0, 1, 1], [], []>} : vector<8x64xbf16>, vector<64x32xbf16>, vector<8x32xf32> -> vector<8x32xf32>
    %293 = vector.extract_strided_slice %4 {offsets = [12, 0], sizes = [1, 32], strides = [1, 1]} : vector<15x32xf32> to vector<1x32xf32>
    %294 = vector.broadcast %293 : vector<1x32xf32> to vector<8x32xf32>
    %295 = arith.addf %292, %294 : vector<8x32xf32>
    %296 = arith.addf %278, %295 : vector<8x32xf32>
    %297 = vector.extract_strided_slice %4 {offsets = [13, 0], sizes = [1, 32], strides = [1, 1]} : vector<15x32xf32> to vector<1x32xf32>
    %298 = vector.extract_strided_slice %4 {offsets = [14, 0], sizes = [1, 32], strides = [1, 1]} : vector<15x32xf32> to vector<1x32xf32>
    %cst_98 = arith.constant dense<0.000000e+00> : vector<8xf32>
    %299 = vector.multi_reduction <add>, %296, %cst_98 [1] : vector<8x32xf32> to vector<8xf32>
    %300 = vector.shape_cast %299 : vector<8xf32> to vector<8x1xf32>
    %cst_99 = arith.constant 3.200000e+01 : f32
    %301 = vector.broadcast %cst_99 : f32 to vector<8x1xf32>
    %302 = arith.divf %300, %301 : vector<8x1xf32>
    %303 = vector.broadcast %302 : vector<8x1xf32> to vector<8x32xf32>
    %304 = arith.subf %296, %303 : vector<8x32xf32>
    %305 = arith.mulf %304, %304 : vector<8x32xf32>
    %cst_100 = arith.constant dense<0.000000e+00> : vector<8xf32>
    %306 = vector.multi_reduction <add>, %305, %cst_100 [1] : vector<8x32xf32> to vector<8xf32>
    %307 = vector.shape_cast %306 : vector<8xf32> to vector<8x1xf32>
    %cst_101 = arith.constant 3.200000e+01 : f32
    %308 = vector.broadcast %cst_101 : f32 to vector<8x1xf32>
    %309 = arith.divf %307, %308 : vector<8x1xf32>
    %cst_102 = arith.constant 9.99999974E-6 : f32
    %310 = vector.broadcast %cst_102 : f32 to vector<8x1xf32>
    %311 = arith.addf %309, %310 : vector<8x1xf32>
    %312 = math.rsqrt %311 : vector<8x1xf32>
    %313 = vector.broadcast %312 : vector<8x1xf32> to vector<8x32xf32>
    %314 = arith.mulf %304, %313 : vector<8x32xf32>
    %315 = vector.broadcast %297 : vector<1x32xf32> to vector<8x32xf32>
    %316 = arith.mulf %314, %315 : vector<8x32xf32>
    %317 = vector.broadcast %298 : vector<1x32xf32> to vector<8x32xf32>
    %318 = arith.addf %316, %317 : vector<8x32xf32>
    %319 = vector.shape_cast %318 : vector<8x32xf32> to vector<1x8x32xf32>
    %c0_103 = arith.constant 0 : index
    %c0_104 = arith.constant 0 : index
    %c0_105 = arith.constant 0 : index
    %320 = vector.load %arg19[%c0_103, %c0_104, %c0_105] : memref<1x8x32xf32, #tpu.memory_space<vmem>>, vector<1x8x32xf32>
    tpu.vector_store %arg19[%c0_103, %c0_104, %c0_105], %319 {strides = array<i32>} : memref<1x8x32xf32, #tpu.memory_space<vmem>>, vector<1x8x32xf32>,
    %c1_i32 = arith.constant 1 : i32
    %321 = arith.cmpi eq, %arg1, %c1_i32 : i32
    %322 = arith.extui %321 : i1 to i32
    %c0_i32_106 = arith.constant 0 : i32
    %323 = arith.cmpi ne, %322, %c0_i32_106 : i32
    scf.if %323 {
      %c0_107 = arith.constant 0 : index
      %c0_108 = arith.constant 0 : index
      %324 = vector.load %arg6[%c0_107, %c0_108] : memref<2x32xf32, #tpu.memory_space<vmem>>, vector<1x32xf32>
      %c1 = arith.constant 1 : index
      %c0_109 = arith.constant 0 : index
      %325 = vector.load %arg6[%c1, %c0_109] : memref<2x32xf32, #tpu.memory_space<vmem>>, vector<1x32xf32>
      %cst_110 = arith.constant dense<0.000000e+00> : vector<8xf32>
      %326 = vector.multi_reduction <add>, %318, %cst_110 [1] : vector<8x32xf32> to vector<8xf32>
      %327 = vector.shape_cast %326 : vector<8xf32> to vector<8x1xf32>
      %cst_111 = arith.constant 3.200000e+01 : f32
      %328 = vector.broadcast %cst_111 : f32 to vector<8x1xf32>
      %329 = arith.divf %327, %328 : vector<8x1xf32>
      %330 = vector.broadcast %329 : vector<8x1xf32> to vector<8x32xf32>
      %331 = arith.subf %318, %330 : vector<8x32xf32>
      %332 = arith.mulf %331, %331 : vector<8x32xf32>
      %cst_112 = arith.constant dense<0.000000e+00> : vector<8xf32>
      %333 = vector.multi_reduction <add>, %332, %cst_112 [1] : vector<8x32xf32> to vector<8xf32>
      %334 = vector.shape_cast %333 : vector<8xf32> to vector<8x1xf32>
      %cst_113 = arith.constant 3.200000e+01 : f32
      %335 = vector.broadcast %cst_113 : f32 to vector<8x1xf32>
      %336 = arith.divf %334, %335 : vector<8x1xf32>
      %cst_114 = arith.constant 9.99999974E-6 : f32
      %337 = vector.broadcast %cst_114 : f32 to vector<8x1xf32>
      %338 = arith.addf %336, %337 : vector<8x1xf32>
      %339 = math.rsqrt %338 : vector<8x1xf32>
      %340 = vector.broadcast %339 : vector<8x1xf32> to vector<8x32xf32>
      %341 = arith.mulf %331, %340 : vector<8x32xf32>
      %342 = vector.broadcast %324 : vector<1x32xf32> to vector<8x32xf32>
      %343 = arith.mulf %341, %342 : vector<8x32xf32>
      %344 = vector.broadcast %325 : vector<1x32xf32> to vector<8x32xf32>
      %345 = arith.addf %343, %344 : vector<8x32xf32>
      %346 = vector.shape_cast %345 : vector<8x32xf32> to vector<1x8x32xf32>
      %c0_115 = arith.constant 0 : index
      %c0_116 = arith.constant 0 : index
      %c0_117 = arith.constant 0 : index
      %c0_118 = arith.constant 0 : index
      %347 = vector.load %arg18[%c0_115, %c0_116, %c0_117, %c0_118] : memref<1x1x8x32xf32, #tpu.memory_space<vmem>>, vector<1x1x8x32xf32>
      %348 = vector.shape_cast %347 : vector<1x1x8x32xf32> to vector<1x8x32xf32>
      %349 = vector.shape_cast %346 : vector<1x8x32xf32> to vector<1x1x8x32xf32>
      tpu.vector_store %arg18[%c0_115, %c0_116, %c0_117, %c0_118], %349 {strides = array<i32>} : memref<1x1x8x32xf32, #tpu.memory_space<vmem>>, vector<1x1x8x32xf32>,
    } else {
    }
    return
  }
  func.func @transform_0(%arg0: i32, %arg1: i32) -> (i32, i32, i32) {
    %c0_i32 = arith.constant 0 : i32
    %c0_i32_0 = arith.constant 0 : i32
    %c0_i32_1 = arith.constant 0 : i32
    return %arg0, %c0_i32, %c0_i32_0 : i32, i32, i32
  }
  func.func @transform_1(%arg0: i32, %arg1: i32) -> (i32, i32, i32) {
    %c0_i32 = arith.constant 0 : i32
    %c0_i32_0 = arith.constant 0 : i32
    %c0_i32_1 = arith.constant 0 : i32
    return %arg0, %c0_i32, %c0_i32_0 : i32, i32, i32
  }
  func.func @transform_2(%arg0: i32, %arg1: i32) -> (i32, i32, i32) {
    %c0_i32 = arith.constant 0 : i32
    %c0_i32_0 = arith.constant 0 : i32
    %c0_i32_1 = arith.constant 0 : i32
    return %arg0, %c0_i32, %c0_i32_0 : i32, i32, i32
  }
  func.func @transform_3(%arg0: i32, %arg1: i32) -> (i32, i32, i32) {
    %c0_i32 = arith.constant 0 : i32
    %c0_i32_0 = arith.constant 0 : i32
    %c0_i32_1 = arith.constant 0 : i32
    return %arg0, %c0_i32, %c0_i32_0 : i32, i32, i32
  }
  func.func @transform_4(%arg0: i32, %arg1: i32) -> (i32, i32) {
    %c0_i32 = arith.constant 0 : i32
    %c0_i32_0 = arith.constant 0 : i32
    %c0_i32_1 = arith.constant 0 : i32
    return %c0_i32, %c0_i32_0 : i32, i32
  }
  func.func @transform_5(%arg0: i32, %arg1: i32) -> (i32, i32, i32) {
    %c0_i32 = arith.constant 0 : i32
    %c0_i32_0 = arith.constant 0 : i32
    %c0_i32_1 = arith.constant 0 : i32
    return %arg1, %c0_i32, %c0_i32_0 : i32, i32, i32
  }
  func.func @transform_6(%arg0: i32, %arg1: i32) -> (i32, i32, i32) {
    %c0_i32 = arith.constant 0 : i32
    %c0_i32_0 = arith.constant 0 : i32
    %c0_i32_1 = arith.constant 0 : i32
    return %arg1, %c0_i32, %c0_i32_0 : i32, i32, i32
  }
  func.func @transform_7(%arg0: i32, %arg1: i32) -> (i32, i32, i32) {
    %c0_i32 = arith.constant 0 : i32
    %c0_i32_0 = arith.constant 0 : i32
    %c0_i32_1 = arith.constant 0 : i32
    return %arg1, %c0_i32, %c0_i32_0 : i32, i32, i32
  }
  func.func @transform_8(%arg0: i32, %arg1: i32) -> (i32, i32, i32) {
    %c0_i32 = arith.constant 0 : i32
    %c0_i32_0 = arith.constant 0 : i32
    %c0_i32_1 = arith.constant 0 : i32
    return %arg1, %c0_i32, %c0_i32_0 : i32, i32, i32
  }
  func.func @transform_9(%arg0: i32, %arg1: i32) -> (i32, i32, i32) {
    %c0_i32 = arith.constant 0 : i32
    %c0_i32_0 = arith.constant 0 : i32
    %c0_i32_1 = arith.constant 0 : i32
    return %arg1, %c0_i32, %c0_i32_0 : i32, i32, i32
  }
  func.func @transform_10(%arg0: i32, %arg1: i32) -> (i32, i32, i32) {
    %c0_i32 = arith.constant 0 : i32
    %c0_i32_0 = arith.constant 0 : i32
    %c0_i32_1 = arith.constant 0 : i32
    return %arg1, %c0_i32, %c0_i32_0 : i32, i32, i32
  }
  func.func @transform_11(%arg0: i32, %arg1: i32) -> (i32, i32, i32) {
    %c0_i32 = arith.constant 0 : i32
    %c0_i32_0 = arith.constant 0 : i32
    %c0_i32_1 = arith.constant 0 : i32
    return %arg1, %c0_i32, %c0_i32_0 : i32, i32, i32
  }
  func.func @transform_12(%arg0: i32, %arg1: i32) -> (i32, i32, i32) {
    %c0_i32 = arith.constant 0 : i32
    %c0_i32_0 = arith.constant 0 : i32
    %c0_i32_1 = arith.constant 0 : i32
    return %arg1, %c0_i32, %c0_i32_0 : i32, i32, i32
  }
  func.func @transform_13(%arg0: i32, %arg1: i32) -> (i32, i32, i32) {
    %c0_i32 = arith.constant 0 : i32
    %c0_i32_0 = arith.constant 0 : i32
    %c0_i32_1 = arith.constant 0 : i32
    return %arg1, %c0_i32, %c0_i32_0 : i32, i32, i32
  }
  func.func @transform_14(%arg0: i32, %arg1: i32) -> (i32, i32, i32) {
    %c0_i32 = arith.constant 0 : i32
    %c0_i32_0 = arith.constant 0 : i32
    %c0_i32_1 = arith.constant 0 : i32
    return %arg1, %c0_i32, %c0_i32_0 : i32, i32, i32
  }
  func.func @transform_15(%arg0: i32, %arg1: i32) -> (i32, i32, i32) {
    %c0_i32 = arith.constant 0 : i32
    %c0_i32_0 = arith.constant 0 : i32
    %c0_i32_1 = arith.constant 0 : i32
    return %arg1, %c0_i32, %c0_i32_0 : i32, i32, i32
  }
  func.func @transform_16(%arg0: i32, %arg1: i32) -> (i32, i32, i32, i32) {
    %c0_i32 = arith.constant 0 : i32
    %c0_i32_0 = arith.constant 0 : i32
    %c0_i32_1 = arith.constant 0 : i32
    %c0_i32_2 = arith.constant 0 : i32
    return %c0_i32, %arg0, %c0_i32_0, %c0_i32_1 : i32, i32, i32, i32
  }
}

</mosaic_0001>

<bundles_post_ra>
// kernel: _forward.1
= control target key start
LH: loop header
LB: loop body
LE: loop exit
PB: predicated region body
PF: predicated region fallthrough
CT: control target
= control target key end

     0   :  { %s2427_s21 = smov 0   ;;  %s2429_s22 = smov 0   ;;  %s2737_s0 = inlined_call_operand.vmem [shape: f32[2,8,32], index: 0, kind: input, shape index: {}]   ;;  %s2738_s1 = inlined_call_operand.vmem [shape: f32[2,8,32], index: 1, kind: input, shape index: {}]   ;;  %s2739_s2 = inlined_call_operand.vmem [shape: bf16[2,16,32], index: 2, kind: input, shape index: {}]   ;;  %s2740_s3 = inlined_call_operand.vmem [shape: bf16[2,16,32], index: 3, kind: input, shape index: {}]   ;;  %s2741_s4 = inlined_call_operand.vmem [shape: f32[2,32], index: 4, kind: input, shape index: {}]   ;;  %s2742_s5 = inlined_call_operand.vmem [shape: bf16[2,32,64], index: 5, kind: input, shape index: {}]   ;;  %s2743_s6 = inlined_call_operand.vmem [shape: bf16[2,32,32], index: 6, kind: input, shape index: {}]   ;;  %s2744_s7 = inlined_call_operand.vmem [shape: bf16[2,32,32], index: 7, kind: input, shape index: {}]   ;;  %s2745_s8 = inlined_call_operand.vmem [shape: bf16[2,32,32], index: 8, kind: input, shape index: {}]   ;;  %s2746_s9 = inlined_call_operand.vmem [shape: bf16[2,32,32], index: 9, kind: input, shape index: {}]   ;;  %s2747_s10 = inlined_call_operand.vmem [shape: bf16[2,32,32], index: 10, kind: input, shape index: {}]   ;;  %s2748_s11 = inlined_call_operand.vmem [shape: bf16[2,32,32], index: 11, kind: input, shape index: {}]   ;;  %s2749_s12 = inlined_call_operand.vmem [shape: bf16[2,32,64], index: 12, kind: input, shape index: {}]   ;;  %s2750_s13 = inlined_call_operand.vmem [shape: f32[2,1,64], index: 13, kind: input, shape index: {}]   ;;  %s2751_s14 = inlined_call_operand.vmem [shape: bf16[2,64,32], index: 14, kind: input, shape index: {}]   ;;  %s2752_s15 = inlined_call_operand.vmem [shape: f32[2,15,32], index: 15, kind: input, shape index: {}]   ;;  %s2753_s16 = inlined_call_operand.vmem [shape: f32[1,2,8,32], index: 16, kind: output, shape index: {}]  }
   0x1   :  { %2760 = sst [smem:[#allocation10_spill]] %s2737_s0  ;;  %s2431_s23 = smov 0  }
   0x2   :  { %2761 = sst [smem:[#allocation11_spill]] %s2738_s1  ;;  %s2433_s24 = smov 0  }
   0x3   :  { %2762 = sst [smem:[#allocation12_spill]] %s2741_s4  ;;  %s2435_s25 = smov 0  }
   0x4   :  { %2763 = sst [smem:[#allocation13_spill]] %s2742_s5 }
   0x5   :  { %2764 = sst [smem:[#allocation14_spill]] %s2743_s6 }
   0x6   :  { %2765 = sst [smem:[#allocation15_spill]] %s2744_s7 }
   0x7   :  { %2766 = sst [smem:[#allocation16_spill]] %s2745_s8 }
   0x8   :  { %2767 = sst [smem:[#allocation17_spill]] %s2746_s9 }
   0x9   :  { %2768 = sst [smem:[#allocation18_spill]] %s2747_s10 }
   0xa   :  { %2769 = sst [smem:[#allocation19_spill]] %s2748_s11 }
   0xb   :  { %2770 = sst [smem:[#allocation20_spill]] %s2750_s13 }
   0xc   :  { %2771 = sst [smem:[#allocation21_spill]] %s2751_s14 }
   0xd   :  { %2772 = sst [smem:[#allocation22_spill]] %s2752_s15 }
   0xe   :  { %2773 = sst [smem:[#allocation23_spill]] %s2753_s16 }
   0xf LB: > { %2774 = sst [smem:[#allocation3_spill]] %s2312_s21  ;;  %s35_s26 = sadd.s32 1, %s2320_s23  ;;  %s2328_s25 = sphi %s2435_s25, %s26_s25   ;;  %s2324_s24 = sphi %s2433_s24, %s2807_s24   ;;  %s2320_s23 = sphi %s2431_s23, %s2806_s23   ;;  %s2316_s22 = sphi %s2429_s22, %s2805_s22   ;;  %s2312_s21 = sphi %s2427_s21, %s2804_s21  }
  0x10   : > { %2775 = sst [smem:[#allocation4_spill]] %s2320_s23  ;;  %s38_s27 = sadd.s32 1, %s2324_s24 }
  0x11   : > { %2776 = sst [smem:[#allocation5_spill]] %s2324_s24  ;;  %p36_p0 = scmp.ge.s32.totalorder %s35_s26, 2 }
  0x12   : > { %2777 = sst [smem:[#allocation6_spill]] %s2328_s25  ;;  %p2014_p1 = scmp.ge.s32.totalorder %s2328_s25, 1 }
  0x13   : > { %p610_p2 = scmp.lt.s32.totalorder %s2328_s25, 5  ;;  %s2809_s26 = smov (%p36_p0, %s35_s26), 0 }
  0x14   : > { %2778 = sst [smem:[#allocation7_spill]] %s2809_s26  ;;  %s2811_s27 = smov (!%p36_p0, %s38_s27), %s2324_s24 }
  0x15   : > { %p611_p3 = pnand %p2014_p1, %p610_p2  ;;  %p40_p4 = scmp.ge.s32.totalorder %s2811_s27, 2 }
  0x17   : > { %s2813_s27 = smov (%p40_p4, %s2811_s27), 0  ;;  %614 = sbr.rel (%p611_p3) target bundleno = 3898 (0xf3a), region = 84 }
  0x18   : > { %2779 = sst [smem:[#allocation8_spill]] %s2813_s27 }
  0x1c   : > { %p725_p5 = scmp.lt.s32.totalorder %s2316_s22, 1  ;;  %p743_p6 = scmp.lt.s32.totalorder %s2312_s21, 1 }
  0x1d   : > { %s2780_s17 = sld [smem:[#allocation10_spill]] }
  0x1e   : > { %s2815_s22 = smov (!%p725_p5, %s2316_s22), 1  ;;  %s2781_s1 = sld [smem:[#allocation11_spill]] }
  0x1f   : > { %s2461_s28 = scalar_select %p743_p6, %s2312_s21, 1 }
  0x20   : > { %s2463_s29 = sshll.u32 %s2815_s22, 3  ;;  %s2783_s5 = sld [smem:[#allocation13_spill]] }
  0x21   : > { %s2161_s21 = sshll.u32 %s2461_s28, 4  ;;  %s2784_s6 = sld [smem:[#allocation14_spill]] }
  0x22   : > { %s2785_s7 = sld [smem:[#allocation15_spill]]  ;;  %s2520_s25 = scalar_lea.vmem %s2749_s12, %s2161_s21 }
  0x23   : > { %s728_s18 = scalar_lea.vmem %s2780_s17, %s2463_s29  ;;  %s2786_s8 = sld [smem:[#allocation16_spill]] }
  0x24   : > { %s732_s27 = scalar_lea.vmem %s2781_s1, %s2463_s29  ;;  %s2787_s9 = sld [smem:[#allocation17_spill]] }
  0x25   : > { %s2788_s10 = sld [smem:[#allocation18_spill]]  ;;  %s2169_s22 = sshll.u32 %s2461_s28, 5 }
  0x26   : > { %s747_s15 = scalar_lea.vmem %s2783_s5, %s2161_s21  ;;  %s2789_s11 = sld [smem:[#allocation19_spill]] }
  0x27   : > { %s752_s1 = scalar_lea.vmem %s2784_s6, %s2161_s21  ;;  %s2791_s30 = sld [smem:[#allocation22_spill]] }
  0x28   : > { %s2495_s23 = scalar_lea.vmem %s2785_s7, %s2161_s21  ;;  %s2792_s17 = sld [smem:[#allocation21_spill]] }
  0x29   : > { %s2500_s4 = scalar_lea.vmem %s2786_s8, %s2161_s21  ;;  %s2793_s20 = sld [smem:[#allocation23_spill]] }
  0x2a   : > { %s2505_s0 = scalar_lea.vmem %s2787_s9, %s2161_s21 }
  0x2b   : > { %s2510_s19 = scalar_lea.vmem %s2788_s10, %s2161_s21 }
  0x2c   : > { %s2515_s24 = scalar_lea.vmem %s2789_s11, %s2161_s21 }
  0x2d   : > { %2790 = sst [smem:[#allocation9_spill]] %s2515_s24  ;;  %s2526_s8 = scalar_lea.vmem %s2791_s30, %s2161_s21 }
  0x2e   : > { %s2531_s10 = scalar_lea.vmem %s2792_s17, %s2169_s22  ;;  %s2794_s24 = sld [smem:[#allocation3_spill]] }
  0x2f   : > { %s799_s11 = scalar_lea.vmem %s2793_s20, %s2463_s29 }
  0x34   : > { %p2042_p7 = scmp.ne.s32.totalorder %s2794_s24, 0 }
  0x36   : > { %804 = sbr.rel (%p2042_p7) target bundleno = 61 (0x3d), region = 88 }
  0x3b   : > { %v805_v0 = vld [vmem:[%s728_s18] sm:$0xff]  ;;  %vm806_vm0 = vcmask 261120  }
  0x3c   : > { %807 = vst.msk [vmem:[#allocation2] sm:$0xff] %vm806_vm0, %v805_v0 }
  0x3d PF: > { %v2174_v1 = vld [vmem:[%s747_s15 + $0x8] sm:$0xff]  ;;  %v2540_v3 = vld [vmem:[%s732_s27] sm:$0xff]  ;;  %s2330_s6 = smov 32   ;;  %vm834_vm1 = vcmask 261120   ;;  %s2332_s7 = smov 96   ;;  %vm937_vm2 = vcmask 1043456  }
  0x3e   : > { %v2543_v4 = vld [vmem:[%s2526_s8] sm:$0xff]  ;;  %v2176_v5 = vld [vmem:[%s752_s1 + $0x8] sm:$0xff]  ;;  %844 = vmatpush.bf16.msra.mxu0 %v2174_v1  ;;  %s2333_s9 = smov 80   ;;  %s2334_s13 = smov 120   ;;  %vm902_vm3 = vcmask 64512   ;;  %vm1141_vm4 = vcmask 130048  }
  0x3f   : > { %v2173_v6 = vld [vmem:[%s747_s15] sm:$0xff]  ;;  %v853_v8 = vperm.slane %v2543_v4, 1  ;;  %886 = vmatpush.bf16.msra.mxu1 %v2176_v5  ;;  %v851_v12 = vperm.slane %v2543_v4, 0  ;;  %s2335_s15 = smov 104   ;;  %s2336_s21 = smov 112   ;;  %v864_v27 = vperm.slane %v2543_v4, 2 }
  0x40   : > { %v2175_v9 = vld [vmem:[%s752_s1] sm:$0xff]  ;;  %s2331_s1 = smov 88   ;;  %s2337_s27 = smov 72   ;;  %vm1143_vm5 = vcmask 195584   ;;  %vm1703_vm13 = vcmask 523264  }
  0x41   : > { %855 = vrot.lane.b32.xlu0 %v853_v8, %s2330_s6  ;;  %s2338_s18 = smov 8   ;;  %s2339_s24 = smov 16  }
  0x42   : > { %845 = vmatpush.bf16.msra.mxu0 %v2173_v6  ;;  %s2340_s26 = smov 24   ;;  %s2795_s16 = scalar_lea.vmem %s2740_s3, %s2463_s29 }
  0x43   : > { %v2538_v2 = vld [vmem:[#allocation2] sm:$0xff]  ;;  %887 = vmatpush.bf16.msra.mxu1 %v2175_v9  ;;  %s2796_s30 = scalar_lea.vmem %s2739_s2, %s2463_s29  ;;  %s2798_s14 = sld [smem:[#allocation20_spill]] }
  0x44   : > { %v816_v7 = vadd.f32 %v2540_v3, %v2538_v2  ;;  %v859_v11 = vpack.c.bf16 %v2538_v2, %v2538_v2 }
  0x46   : > { %v817_v10 = vpack.c.bf16 %v816_v7, %v816_v7  ;;  %2060 = vmatmul.msk.bf16.vlgmr.msra.gmra.mxu1 %vm834_vm1, %v859_v11 }
  0x48   : > { %2051 = vmatmul.msk.bf16.vlgmr.msra.gmra.mxu0 %vm834_vm1, %v817_v10 }
  0x49   : > { %s2799_s17 = scalar_lea.vmem %s2798_s14, %s2461_s28 }
  0xb3   : > { %v856_v13 = vpop.permute.xlu0 %855 }
  0xc3   : > { %v889_v17 = vpop.f32.mrf.mxu1 }
  0xc4   : > { %v890_v28 = vadd.f32 %v889_v17, %v864_v27 }
  0xc5   : > { %v847_v14 = vpop.f32.mrf.mxu0 }
  0xc6   : > { %v852_v15 = vadd.f32 %v851_v12, %v847_v14  ;;  %v858_v16 = vadd.f32 %v856_v13, %v847_v14  ;;  %v2557_v29 = vpack.c.bf16 %v890_v28, %v890_v28 }
  0xc8   : > { %v893_v18 = vmul.f32 0.35355338, %v852_v15  ;;  %v895_v19 = vpack.c.bf16 %v858_v16, %v858_v16  ;;  %v939_v30 = vsel %vm937_vm2, %v2557_v29, 0  ;;  %v993_v9 = vunpack.c.l.b16 %v2557_v29 }
  0xc9   : > { %948 = vmatpush.bf16.msra.mxu3 %v939_v30 }
  0xca   : > { %v898_v20 = vunpack.c.l.b16 %v895_v19  ;;  %v894_v21 = vpack.c.bf16 %v893_v18, %v893_v18  ;;  %v994_v10 = vpack.c.b16 %v993_v9, %v993_v9 }
  0xcb   : > { %v891_v24 = vpop.f32.mrf.mxu1 }
  0xcc   : > { %v899_v22 = vpack.c.b16 %v898_v20, %v898_v20  ;;  %v955_v25 = vunpack.c.l.b16 %v894_v21 }
  0xcd   : > { %v849_v23 = vpop.f32.mrf.mxu0 }
  0xce   : > { %959 = vrot.lane.b32.xlu2 %v899_v22, %s2331_s1  ;;  %900 = vrot.lane.b32.xlu0 %v899_v22, %s2332_s7  ;;  %v956_v26 = vpack.c.b16 %v955_v25, %v955_v25 }
  0xd6   : > { %1018 = vrot.lane.b32.xlu0 %v899_v22, %s2333_s9  ;;  %957 = vrot.lane.b32.xlu2 %v956_v26, %s2334_s13 }
  0xde   : > { %1072 = vrot.lane.b32.xlu0 %v956_v26, %s2335_s15  ;;  %1016 = vrot.lane.b32.xlu2 %v956_v26, %s2336_s21 }
 0x128   : > { %v960_v31 = vpop.permute.xlu2 %959 }
 0x129   : > { %v965_v32 = vsel %vm902_vm3, %v960_v31, 0 }
 0x12a   : > { %974 = vmatpush.bf16.xpose.msrb.mxu3 %v965_v32 }
 0x130   : > { %v958_v35 = vpop.permute.xlu2 %957 }
 0x138   : > { %v1017_v38 = vpop.permute.xlu2 %1016 }
 0x140   : > { %v901_v33 = vpop.permute.xlu0 %900 }
 0x141   : > { %v907_v34 = vsel %vm902_vm3, %v901_v33, 0 }
 0x142   : > { %916 = vmatpush.bf16.xpose.msra.mxu2 %v907_v34 }
 0x148   : > { %v1019_v36 = vpop.permute.xlu0 %1018 }
 0x149   : > { %2061 = vmatmul.msk.bf16.vlgmr.msra.gmra.mxu2 %vm902_vm3, %v894_v21  ;;  %v1024_v37 = vsel %vm902_vm3, %v1019_v36, 0 }
 0x14a   : > { %1033 = vmatpush.bf16.xpose.msrb.mxu1 %v1024_v37 }
 0x150   : > { %v1073_v45 = vpop.permute.xlu0 %1072 }
 0x151   : > { %2065 = vmatmul.msk.bf16.vlgmr.msrb.gmra.mxu1 %vm902_vm3, %v1017_v38 }
 0x1cc   : > { %v918_v39 = vpop.f32.mrf.mxu2 }
 0x1cd   : > { %v922_v40 = vsel %vm902_vm3, %v918_v39, -inf }
 0x1ce   : > { %v1035_v41 = vpop.f32.mrf.mxu1  ;;  %923 = vmax.xlane.f32.xlu1 %v922_v40 }
 0x1cf   : > { %v1039_v42 = vsel %vm902_vm3, %v1035_v41, -inf }
 0x1d0   : > { %1040 = vmax.xlane.f32.xlu0 %v1039_v42 }
 0x1d4   : > { %v920_v43 = vpop.f32.mrf.mxu2 }
 0x1d6   : > { %v1037_v44 = vpop.f32.mrf.mxu1 }
 0x241   : > { %v924_v46 = vpop.xlane.xlu1 %923 }
 0x242   : > { %v925_v47 = vsub.f32 %v918_v39, %v924_v46  ;;  %v2177_v46 = vld [vmem:[%s2495_s23] sm:$0xff] }
 0x243   : > { %v1041_v48 = vpop.xlane.xlu0 %1040 }
 0x244   : > { %v926_v49 = vmul.f32 1.442695, %v925_v47  ;;  %v1042_v50 = vsub.f32 %v1035_v41, %v1041_v48 }
 0x246   : > { %2246 = vpow2.f32 %v926_v49  ;;  %v1043_v51 = vmul.f32 1.442695, %v1042_v50 }
 0x248   : > { %2248 = vpow2.f32 %v1043_v51 }
 0x24c   : > { %v2247_v52 = vpop.eup %2246 }
 0x24d   : > { %v928_v53 = vsel %vm902_vm3, %v2247_v52, 0.0 }
 0x24e   : > { %v2249_v54 = vpop.eup %2248  ;;  %929 = vadd.xlane.f32.xlu1 %v928_v53 }
 0x24f   : > { %v1045_v55 = vsel %vm902_vm3, %v2249_v54, 0.0 }
 0x250   : > { %1046 = vadd.xlane.f32.xlu0 %v1045_v55 }
 0x267   : > { %1074 = vrot.lane.b32.xlu1 %v899_v22, %s2337_s27 }
 0x2c1   : > { %v930_v56 = vpop.xlane.xlu1 %929 }
 0x2c2   : > { %2250 = vrcp.f32 %v930_v56 }
 0x2c3   : > { %v1047_v20 = vpop.xlane.xlu0 %1046 }
 0x2c8   : > { %v2251_v57 = vpop.eup %2250 }
 0x2c9   : > { %v932_v58 = vmul.f32 %v2251_v57, %v2247_v52 }
 0x2cb   : > { %v933_v59 = vpack.c.bf16 %v932_v58, %v932_v58 }
 0x2cd   : > { %2062 = vmatmul.msk.bf16.vlgmr.msra.gmra.mxu3 %vm902_vm3, %v933_v59 }
 0x2d9   : > { %v1075_v60 = vpop.permute.xlu1 %1074 }
 0x2da   : > { %v1080_v61 = vsel %vm902_vm3, %v1075_v60, 0  ;;  %v2341_v60 = vmov 32.0  }
 0x2db   : > { %1089 = vmatpush.bf16.xpose.msra.mxu3 %v1080_v61  ;;  %v2182_v61 = vld [vmem:[%s2505_s0 + $0x8] sm:$0xff] }
 0x2dd   : > { %2063 = vmatmul.msk.bf16.vlgmr.msrb.gmra.mxu3 %vm902_vm3, %v958_v35 }
 0x2e3   : > { %1279 = vmatpush.bf16.msrb.mxu3 %v2182_v61 }
 0x2ed   : > { %2067 = vmatmul.msk.bf16.vlgmr.msra.gmra.mxu3 %vm902_vm3, %v1073_v45  ;;  %v2178_v45 = vld [vmem:[%s2495_s23 + $0x8] sm:$0xff] }
 0x2ee   : > { %1172 = vmatpush.bf16.msra.mxu1 %v2178_v45 }
 0x2f2   : > { %1173 = vmatpush.bf16.msra.mxu1 %v2177_v46 }
 0x350   : > { %v2574_v62 = vpop.f32.mrf.mxu3 }
 0x358   : > { %v952_v63 = vpop.f32.mrf.mxu3 }
 0x360   : > { %v976_v0 = vpop.f32.mrf.mxu3 }
 0x361   : > { %v980_v1 = vsel %vm902_vm3, %v976_v0, -inf }
 0x362   : > { %981 = vmax.xlane.f32.xlu2 %v980_v1 }
 0x368   : > { %v978_v5 = vpop.f32.mrf.mxu3 }
 0x370   : > { %v1091_v6 = vpop.f32.mrf.mxu3 }
 0x371   : > { %v1095_v7 = vsel %vm902_vm3, %v1091_v6, -inf }
 0x372   : > { %1096 = vmax.xlane.f32.xlu1 %v1095_v7 }
 0x378   : > { %v1093_v8 = vpop.f32.mrf.mxu3 }
 0x38b   : > { %1051 = vrot.lane.b32.xlu1 %v994_v10, %s2336_s21 }
 0x3d5   : > { %v982_v11 = vpop.xlane.xlu2 %981 }
 0x3d6   : > { %v983_v12 = vsub.f32 %v976_v0, %v982_v11  ;;  %v2181_v11 = vld [vmem:[%s2505_s0] sm:$0xff] }
 0x3d7   : > { %1280 = vmatpush.bf16.msrb.mxu3 %v2181_v11 }
 0x3d8   : > { %v984_v13 = vmul.f32 1.442695, %v983_v12  ;;  %v2172_v12 = vld [vmem:[%s2795_s16] sm:$0xff] }
 0x3da   : > { %2252 = vpow2.f32 %v984_v13  ;;  %2099 = vmatmul.msk.bf16.vlgmr.msrb.gmra.mxu3 %vm834_vm1, %v2172_v12  ;;  %v2180_v13 = vld [vmem:[%s2500_s4 + $0x8] sm:$0xff] }
 0x3e0   : > { %v2253_v14 = vpop.eup %2252 }
 0x3e1   : > { %v986_v15 = vsel %vm902_vm3, %v2253_v14, 0.0 }
 0x3e2   : > { %987 = vadd.xlane.f32.xlu2 %v986_v15 }
 0x3e5   : > { %v1097_v16 = vpop.xlane.xlu1 %1096 }
 0x3e6   : > { %v1098_v17 = vsub.f32 %v1091_v6, %v1097_v16 }
 0x3e8   : > { %v1099_v18 = vmul.f32 1.442695, %v1098_v17 }
 0x3ea   : > { %2254 = vpow2.f32 %v1099_v18 }
 0x3eb   : > { %2256 = vrcp.f32 %v1047_v20 }
 0x3f0   : > { %v2255_v19 = vpop.eup %2254 }
 0x3f1   : > { %v1101_v21 = vsel %vm902_vm3, %v2255_v19, 0.0  ;;  %v2257_v22 = vpop.eup %2256 }
 0x3f2   : > { %1102 = vadd.xlane.f32.xlu0 %v1101_v21  ;;  %v1049_v23 = vmul.f32 %v2257_v22, %v2249_v54  ;;  %v1150_v54 = vperm.slane %v2543_v4, 3 }
 0x3f4   : > { %v1050_v26 = vpack.c.bf16 %v1049_v23, %v1049_v23 }
 0x3fa   : > { %995 = vrot.lane.b32.xlu2 %v994_v10, %s2334_s13 }
 0x3fd   : > { %v1052_v24 = vpop.permute.xlu1 %1051 }
 0x3fe   : > { %v1057_v25 = vsel %vm937_vm2, %v1052_v24, 0  ;;  %v1209_v24 = vperm.slane %v2543_v4, 4 }
 0x3ff   : > { %1066 = vmatpush.bf16.msrb.mxu2 %v1057_v25 }
 0x402   : > { %2066 = vmatmul.msk.bf16.vlgmr.msrb.gmra.mxu2 %vm902_vm3, %v1050_v26  ;;  %v1211_v26 = vperm.slane %v2543_v4, 5 }
 0x403   : > { %1241 = vmatpush.bf16.msra.mxu2 %v2180_v13 }
 0x406   : > { %1107 = vrot.lane.b32.xlu0 %v994_v10, %s2335_s15 }
 0x455   : > { %v988_v27 = vpop.xlane.xlu2 %987 }
 0x456   : > { %2258 = vrcp.f32 %v988_v27 }
 0x45c   : > { %v2259_v28 = vpop.eup %2258 }
 0x45d   : > { %v990_v29 = vmul.f32 %v2259_v28, %v2253_v14  ;;  %v996_v30 = vpop.permute.xlu2 %995  ;;  %v2179_v14 = vld [vmem:[%s2500_s4] sm:$0xff] }
 0x45e   : > { %v1001_v31 = vsel %vm937_vm2, %v996_v30, 0  ;;  %1242 = vmatpush.bf16.msra.mxu2 %v2179_v14 }
 0x45f   : > { %1010 = vmatpush.bf16.msrb.mxu0 %v1001_v31  ;;  %v991_v32 = vpack.c.bf16 %v990_v29, %v990_v29 }
 0x462   : > { %2064 = vmatmul.msk.bf16.vlgmr.msrb.gmra.mxu0 %vm902_vm3, %v991_v32  ;;  %v1252_v32 = vperm.slane %v2543_v4, 7 }
 0x465   : > { %v1103_v33 = vpop.xlane.xlu0 %1102 }
 0x466   : > { %2260 = vrcp.f32 %v1103_v33  ;;  %v1282_v33 = vpop.f32.mrf.mxu3 }
 0x467   : > { %2262 = vrcp.f32 %v2341_v60 }
 0x46c   : > { %v2261_v34 = vpop.eup %2260 }
 0x46d   : > { %v1105_v35 = vmul.f32 %v2261_v34, %v2255_v19  ;;  %v1283_v34 = vadd.f32 %v1282_v33, %v1252_v32 }
 0x46f   : > { %v1106_v38 = vpack.c.bf16 %v1105_v35, %v1105_v35  ;;  %v1328_v35 = vpack.c.bf16 %v1283_v34, %v1283_v34 }
 0x478   : > { %v1108_v36 = vpop.permute.xlu0 %1107 }
 0x479   : > { %v1113_v37 = vsel %vm937_vm2, %v1108_v36, 0  ;;  %v1284_v36 = vpop.f32.mrf.mxu3 }
 0x47a   : > { %1122 = vmatpush.bf16.msra.mxu0 %v1113_v37  ;;  %v1285_v37 = vadd.f32 %v1284_v36, %v1252_v32 }
 0x47d   : > { %2068 = vmatmul.msk.bf16.vlgmr.msra.gmra.mxu0 %vm902_vm3, %v1106_v38  ;;  %v1334_v38 = vunpack.c.l.b16 %v1328_v35 }
 0x485   : > { %v1068_v39 = vpop.f32.mrf.mxu2 }
 0x48d   : > { %v1070_v40 = vpop.f32.mrf.mxu2 }
 0x4df   : > { %v1012_v41 = vpop.f32.mrf.mxu0 }
 0x4e0   : > { %1129 = vrot.lane.b32.xlu2 %v1012_v41, %s2338_s18 }
 0x4e7   : > { %v1014_v42 = vpop.f32.mrf.mxu0 }
 0x4e8   : > { %1133 = vrot.lane.b32.xlu2 %v1068_v39, %s2339_s24  ;;  %v1329_v39 = vpack.c.bf16 %v1285_v37, %v1285_v37  ;;  %v1219_v42 = vperm.slane %v2543_v4, 6 }
 0x4ea   : > { %v1335_v40 = vunpack.c.l.b16 %v1329_v39 }
 0x4ec   : > { %v1336_v41 = vpack.c.b16 %v1335_v40, %v1334_v38 }
 0x4fa   : > { %v1124_v43 = vpop.f32.mrf.mxu0 }
 0x4fb   : > { %1137 = vrot.lane.b32.xlu1 %v1124_v43, %s2340_s26 }
 0x502   : > { %v1126_v44 = vpop.f32.mrf.mxu0 }
 0x503   : > { %1395 = vrot.lane.b32.xlu1 %v1336_v41, %s2334_s13 }
 0x50b   : > { %1449 = vrot.lane.b32.xlu1 %v1336_v41, %s2336_s21 }
 0x53a   : > { %v1130_v47 = vpop.permute.xlu2 %1129 }
 0x53b   : > { %v1140_v49 = vsel %vm902_vm3, %v2574_v62, %v1130_v47  ;;  %v2263_v62 = vpop.eup %2262 }
 0x53c   : > { %v1184_v63 = vmul.f32 32.0, %v2263_v62  ;;  %vm1188_vm6 = vweird.f32 %v2263_v62 }
 0x53e   : > { %v1185_v0 = vsub.f32 1.0, %v1184_v63 }
 0x540   : > { %v1186_v1 = vmul.f32 %v2263_v62, %v1185_v0 }
 0x542   : > { %v1134_v48 = vpop.permute.xlu2 %1133  ;;  %v1187_v5 = vadd.f32 %v2263_v62, %v1186_v1  ;;  %v2651_v1 = vld [vmem:[%s2526_s8 + $0x8] sm:$0x7f]  ;;  %s2797_s8 = sld [smem:[#allocation9_spill]] }
 0x543   : > { %v1142_v50 = vsel %vm1141_vm4, %v1140_v49, %v1134_v48 }
 0x544   : > { %v2604_v6 = vsel %vm1188_vm6, %v2263_v62, %v1187_v5 }
 0x56d   : > { %v1138_v51 = vpop.permute.xlu1 %1137 }
 0x56e   : > { %v1144_v52 = vsel %vm1143_vm5, %v1142_v50, %v1138_v51 }
 0x56f   : > { %v1145_v53 = vpack.c.bf16 %v1144_v52, %v1144_v52 }
 0x571   : > { %2077 = vmatmul.msk.bf16.vlgmr.msra.gmra.mxu1 %vm834_vm1, %v1145_v53  ;;  %v2184_v53 = vld [vmem:[%s2510_s19 + $0x8] sm:$0xff] }
 0x572   : > { %1318 = vmatpush.bf16.msrb.mxu0 %v2184_v53 }
 0x575   : > { %v1396_v4 = vpop.permute.xlu1 %1395 }
 0x576   : > { %v1401_v50 = vsel %vm902_vm3, %v1396_v4, 0 }
 0x577   : > { %1410 = vmatpush.bf16.xpose.msra.mxu3 %v1401_v50 }
 0x57d   : > { %v1450_v51 = vpop.permute.xlu1 %1449 }
 0x57e   : > { %v1455_v52 = vsel %vm902_vm3, %v1450_v51, 0 }
 0x5ee   : > { %v1175_v55 = vpop.f32.mrf.mxu1 }
 0x5ef   : > { %v1176_v56 = vadd.f32 %v1175_v55, %v1150_v54  ;;  %v2183_v54 = vld [vmem:[%s2510_s19] sm:$0xff] }
 0x5f0   : > { %v2171_v55 = vld [vmem:[%s2796_s30] sm:$0xff]  ;;  %1319 = vmatpush.bf16.msrb.mxu0 %v2183_v54 }
 0x5f1   : > { %v1179_v57 = vadd.f32 %v1176_v56, %v2538_v2 }
 0x5f3   : > { %v1180_v58 = vsel %vm834_vm1, %v1179_v57, 0.0  ;;  %2112 = vmatmul.msk.bf16.vlgmr.msrb.gmra.mxu0 %vm834_vm1, %v2171_v55 }
 0x5f4   : > { %1181 = vadd.xlane.f32.xlu0 %v1180_v58 }
 0x5f6   : > { %v1177_v59 = vpop.f32.mrf.mxu1 }
 0x667   : > { %v1182_v2 = vpop.xlane.xlu0 %1181 }
 0x668   : > { %v1190_v7 = vmul.f32 %v2604_v6, %v1182_v2 }
 0x66a   : > { %v1191_v8 = vsub.f32 %v1179_v57, %v1190_v7  ;;  %v1291_v7 = vperm.slane %v2651_v1, 0 }
 0x66c   : > { %v1192_v9 = vmul.f32 %v1191_v8, %v1191_v8 }
 0x66e   : > { %v1193_v10 = vsel %vm834_vm1, %v1192_v9, 0.0 }
 0x66f   : > { %1194 = vadd.xlane.f32.xlu2 %v1193_v10 }
 0x670   : > { %v1321_v5 = vpop.f32.mrf.mxu0 }
 0x671   : > { %v1322_v9 = vadd.f32 %v1321_v5, %v1291_v7 }
 0x673   : > { %v1330_v10 = vpack.c.bf16 %v1322_v9, %v1322_v9  ;;  %v2186_v9 = vld [vmem:[%s2797_s8 + $0x8] sm:$0xff] }
 0x678   : > { %v1323_v12 = vpop.f32.mrf.mxu0 }
 0x679   : > { %v1324_v14 = vadd.f32 %v1323_v12, %v1291_v7 }
 0x6e2   : > { %v1195_v15 = vpop.xlane.xlu2 %1194 }
 0x6e3   : > { %v1196_v16 = vmul.f32 %v1195_v15, %v2604_v6 }
 0x6e5   : > { %v1197_v17 = vadd.f32 1e-05, %v1196_v16  ;;  %v1370_v16 = vunpack.c.l.b16 %v1330_v10  ;;  %v2185_v10 = vld [vmem:[%s2797_s8] sm:$0xff] }
 0x6e7   : > { %2264 = vrsqrt.f32 %v1197_v17  ;;  %vm1204_vm8 = vweird.f32 %v1197_v17 }
 0x6ed   : > { %v2265_v18 = vpop.eup %2264 }
 0x6ee   : > { %v1199_v19 = vmul.f32 %v2265_v18, %v1197_v17  ;;  %vm1205_vm7 = vweird.f32 %v2265_v18  ;;  %v1331_v17 = vpack.c.bf16 %v1324_v14, %v1324_v14 }
 0x6ef   : > { %vm1206_vm9 = vmor %vm1204_vm8, %vm1205_vm7 }
 0x6f0   : > { %v1200_v20 = vmul.f32 %v2265_v18, %v1199_v19  ;;  %v1371_v19 = vunpack.c.l.b16 %v1331_v17 }
 0x6f2   : > { %v1201_v21 = vmul.f32 0.5, %v1200_v20  ;;  %v1372_v20 = vpack.c.b16 %v1371_v19, %v1370_v16 }
 0x6f4   : > { %v1202_v22 = vsub.f32 1.5, %v1201_v21  ;;  %1384 = vmatpush.bf16.msrb.mxu2 %v1372_v20 }
 0x6f6   : > { %v1203_v23 = vmul.f32 %v2265_v18, %v1202_v22 }
 0x6f8   : > { %v1207_v25 = vsel %vm1206_vm9, %v2265_v18, %v1203_v23 }
 0x6f9   : > { %v1208_v27 = vmul.f32 %v1207_v25, %v1191_v8 }
 0x6fb   : > { %v1210_v28 = vmul.f32 %v1209_v24, %v1208_v27 }
 0x6fd   : > { %v2620_v29 = vadd.f32 %v1211_v26, %v1210_v28 }
 0x6ff   : > { %v1213_v30 = vadd.f32 %v2620_v29, %v2540_v3  ;;  %v1341_v3 = vsel %vm902_vm3, %v1336_v41, 0 }
 0x700   : > { %1350 = vmatpush.bf16.xpose.msrb.mxu1 %v1341_v3 }
 0x701   : > { %v1214_v31 = vpack.c.bf16 %v1213_v30, %v1213_v30 }
 0x703   : > { %2086 = vmatmul.msk.bf16.vlgmr.msra.gmra.mxu2 %vm834_vm1, %v1214_v31 }
 0x708   : > { %1464 = vmatpush.bf16.xpose.msra.mxu1 %v1455_v52 }
 0x786   : > { %v1244_v43 = vpop.f32.mrf.mxu2 }
 0x787   : > { %v1245_v44 = vadd.f32 %v1244_v43, %v1219_v42 }
 0x789   : > { %v1326_v45 = vmul.f32 0.35355338, %v1245_v44 }
 0x78b   : > { %v1327_v46 = vpack.c.bf16 %v1326_v45, %v1326_v45 }
 0x78d   : > { %v1391_v47 = vunpack.c.l.b16 %v1327_v46  ;;  %2113 = vmatmul.msk.bf16.vlgmr.msrb.gmra.mxu1 %vm902_vm3, %v1327_v46 }
 0x78e   : > { %v1246_v48 = vpop.f32.mrf.mxu2  ;;  %1597 = vmatpush.bf16.msrb.mxu1 %v2186_v9 }
 0x78f   : > { %v1392_v49 = vpack.c.b16 %v1391_v47, %v1391_v47 }
 0x791   : > { %1501 = vrot.lane.b32.xlu0 %v1392_v49, %s2335_s15  ;;  %1393 = vrot.lane.b32.xlu1 %v1392_v49, %s2334_s13 }
 0x792   : > { %1598 = vmatpush.bf16.msrb.mxu1 %v2185_v10 }
 0x799   : > { %1503 = vrot.lane.b32.xlu1 %v1336_v41, %s2335_s15 }
 0x7a1   : > { %1447 = vrot.lane.b32.xlu1 %v1392_v49, %s2336_s21 }
 0x803   : > { %v1394_v56 = vpop.permute.xlu1 %1393  ;;  %v1502_v62 = vpop.permute.xlu0 %1501 }
 0x804   : > { %2115 = vmatmul.msk.bf16.vlgmr.msra.gmra.mxu3 %vm902_vm3, %v1394_v56 }
 0x80a   : > { %v1352_v57 = vpop.f32.mrf.mxu1 }
 0x80b   : > { %v1504_v58 = vpop.permute.xlu1 %1503  ;;  %v1356_v59 = vsel %vm1141_vm4, %v1352_v57, -inf }
 0x80c   : > { %v1509_v60 = vsel %vm902_vm3, %v1504_v58, 0  ;;  %1357 = vmax.xlane.f32.xlu2 %v1356_v59 }
 0x80d   : > { %1518 = vmatpush.bf16.xpose.msrb.mxu3 %v1509_v60 }
 0x812   : > { %v1354_v61 = vpop.f32.mrf.mxu1 }
 0x813   : > { %v1448_v63 = vpop.permute.xlu1 %1447 }
 0x814   : > { %2117 = vmatmul.msk.bf16.vlgmr.msra.gmra.mxu1 %vm902_vm3, %v1448_v63  ;;  %2119 = vmatmul.msk.bf16.vlgmr.msrb.gmra.mxu3 %vm902_vm3, %v1502_v62 }
 0x87f   : > { %v1358_v0 = vpop.xlane.xlu2 %1357 }
 0x880   : > { %v1359_v2 = vsub.f32 %v1352_v57, %v1358_v0 }
 0x882   : > { %v1360_v8 = vmul.f32 1.442695, %v1359_v2 }
 0x884   : > { %2266 = vpow2.f32 %v1360_v8 }
 0x887   : > { %v1412_v11 = vpop.f32.mrf.mxu3 }
 0x888   : > { %v1416_v13 = vsel %vm1141_vm4, %v1412_v11, -inf }
 0x889   : > { %1417 = vmax.xlane.f32.xlu1 %v1416_v13 }
 0x88a   : > { %v2267_v15 = vpop.eup %2266 }
 0x88b   : > { %v1362_v18 = vsel %vm1141_vm4, %v2267_v15, 0.0 }
 0x88c   : > { %1363 = vadd.xlane.f32.xlu0 %v1362_v18  ;;  %v1575_v18 = vperm.slane %v2651_v1, 1 }
 0x88f   : > { %v1414_v21 = vpop.f32.mrf.mxu3 }
 0x891   : > { %v1466_v22 = vpop.f32.mrf.mxu1 }
 0x892   : > { %v1470_v23 = vsel %vm1141_vm4, %v1466_v22, -inf }
 0x893   : > { %1471 = vmax.xlane.f32.xlu2 %v1470_v23 }
 0x897   : > { %v1520_v24 = vpop.f32.mrf.mxu3 }
 0x898   : > { %v1524_v26 = vsel %vm1141_vm4, %v1520_v24, -inf }
 0x899   : > { %v1468_v25 = vpop.f32.mrf.mxu1 }
 0x89b   : > { %1525 = vmax.xlane.f32.xlu2 %v1524_v26 }
 0x89f   : > { %v1522_v27 = vpop.f32.mrf.mxu3 }
 0x8a0   : > { %1536 = vrot.lane.b32.xlu0 %v1372_v20, %s2335_s15 }
 0x8b3   : > { %1428 = vrot.lane.b32.xlu2 %v1372_v20, %s2334_s13 }
 0x8fc   : > { %v1418_v28 = vpop.xlane.xlu1 %1417 }
 0x8fd   : > { %v1419_v30 = vsub.f32 %v1412_v11, %v1418_v28 }
 0x8ff   : > { %v1420_v31 = vmul.f32 1.442695, %v1419_v30  ;;  %v1364_v32 = vpop.xlane.xlu0 %1363  ;;  %v2188_v30 = vld [vmem:[%s2520_s25 + $0x8] sm:$0xff] }
 0x900   : > { %2268 = vrcp.f32 %v1364_v32  ;;  %v2192_v32 = vld [vmem:[%s2531_s10 + $0x18] sm:$0xff] }
 0x901   : > { %2270 = vpow2.f32 %v1420_v31  ;;  %v2187_v31 = vld [vmem:[%s2520_s25] sm:$0xff]  ;;  %1711 = vmatpush.bf16.msra.mxu3 %v2192_v32 }
 0x906   : > { %v2269_v33 = vpop.eup %2268  ;;  %v1472_v34 = vpop.xlane.xlu2 %1471 }
 0x907   : > { %v2271_v35 = vpop.eup %2270  ;;  %v1366_v36 = vmul.f32 %v2269_v33, %v2267_v15  ;;  %v1473_v37 = vsub.f32 %v1466_v22, %v1472_v34  ;;  %v2191_v34 = vld [vmem:[%s2531_s10 + $0x10] sm:$0xff] }
 0x908   : > { %v1422_v38 = vsel %vm1141_vm4, %v2271_v35, 0.0  ;;  %1712 = vmatpush.bf16.msra.mxu3 %v2191_v34 }
 0x909   : > { %v1367_v39 = vpack.c.bf16 %v1366_v36, %v1366_v36  ;;  %v1474_v40 = vmul.f32 1.442695, %v1473_v37  ;;  %1423 = vadd.xlane.f32.xlu2 %v1422_v38 }
 0x90b   : > { %2272 = vpow2.f32 %v1474_v40  ;;  %2114 = vmatmul.msk.bf16.vlgmr.msrb.gmra.mxu2 %vm1141_vm4, %v1367_v39 }
 0x90e   : > { %v1526_v41 = vpop.xlane.xlu2 %1525 }
 0x90f   : > { %v1527_v3 = vsub.f32 %v1520_v24, %v1526_v41 }
 0x911   : > { %v2273_v42 = vpop.eup %2272  ;;  %v1528_v43 = vmul.f32 1.442695, %v1527_v3  ;;  %v1627_v3 = vperm.slane %v2651_v1, 2 }
 0x912   : > { %v1476_v44 = vsel %vm1141_vm4, %v2273_v42, 0.0  ;;  %v1537_v45 = vpop.permute.xlu0 %1536 }
 0x913   : > { %2274 = vpow2.f32 %v1528_v43  ;;  %1477 = vadd.xlane.f32.xlu1 %v1476_v44  ;;  %v1629_v43 = vperm.slane %v2651_v1, 3 }
 0x916   : > { %v1429_v46 = vpop.permute.xlu2 %1428 }
 0x917   : > { %1441 = vmatpush.bf16.msra.mxu0 %v1429_v46 }
 0x919   : > { %v2275_v47 = vpop.eup %2274 }
 0x91a   : > { %v1530_v48 = vsel %vm1141_vm4, %v2275_v47, 0.0 }
 0x91b   : > { %1549 = vmatpush.bf16.msrb.mxu0 %v1537_v45  ;;  %1531 = vadd.xlane.f32.xlu1 %v1530_v48  ;;  %v2190_v48 = vld [vmem:[%s2531_s10 + $0x8] sm:$0xff] }
 0x91c   : > { %1713 = vmatpush.bf16.msra.mxu3 %v2190_v48 }
 0x921   : > { %1482 = vrot.lane.b32.xlu2 %v1372_v20, %s2336_s21 }
 0x97c   : > { %v1424_v49 = vpop.xlane.xlu2 %1423 }
 0x97d   : > { %2276 = vrcp.f32 %v1424_v49  ;;  %v2189_v49 = vld [vmem:[%s2531_s10] sm:$0xff]  ;;  %s2800_s10 = sld [smem:[#allocation3_spill]] }
 0x97e   : > { %1714 = vmatpush.bf16.msra.mxu3 %v2189_v49 }
 0x983   : > { %v2277_v4 = vpop.eup %2276  ;;  %p2156_p8 = scmp.ne.s32.totalorder %s2800_s10, 1 }
 0x984   : > { %v1426_v50 = vmul.f32 %v2277_v4, %v2271_v35  ;;  %v1483_v51 = vpop.permute.xlu2 %1482  ;;  %v2245_v4 = vld [vmem:[%s2799_s17] ss:$0 sm:$0xff]  ;;  %s2801_s20 = sld [smem:[#allocation12_spill]] (!%p2156_p8) }
 0x985   : > { %1495 = vmatpush.bf16.msra.mxu2 %v1483_v51 }
 0x986   : > { %v1427_v52 = vpack.c.bf16 %v1426_v50, %v1426_v50  ;;  %v1478_v53 = vpop.xlane.xlu1 %1477 }
 0x987   : > { %2278 = vrcp.f32 %v1478_v53 }
 0x988   : > { %2116 = vmatmul.msk.bf16.vlgmr.msra.gmra.mxu0 %vm1141_vm4, %v1427_v52 }
 0x989   : > { %1661 = vmatpush.bf16.msrb.mxu2 %v2188_v30 }
 0x98d   : > { %v2279_v54 = vpop.eup %2278  ;;  %1662 = vmatpush.bf16.msrb.mxu2 %v2187_v31 }
 0x98e   : > { %v1480_v55 = vmul.f32 %v2279_v54, %v2273_v42  ;;  %v1386_v56 = vpop.f32.mrf.mxu2  ;;  %v1532_v57 = vpop.xlane.xlu1 %1531 }
 0x98f   : > { %2280 = vrcp.f32 %v1532_v57 }
 0x990   : > { %v1481_v58 = vpack.c.bf16 %v1480_v55, %v1480_v55  ;;  %v1678_v55 = vperm.slane %v2651_v1, 4 }
 0x992   : > { %2118 = vmatmul.msk.bf16.vlgmr.msra.gmra.mxu2 %vm1141_vm4, %v1481_v58 }
 0x995   : > { %v2281_v59 = vpop.eup %2280 }
 0x996   : > { %v1534_v60 = vmul.f32 %v2281_v59, %v2275_v47  ;;  %v1388_v61 = vpop.f32.mrf.mxu2 }
 0x998   : > { %v1535_v62 = vpack.c.bf16 %v1534_v60, %v1534_v60 }
 0x99a   : > { %2120 = vmatmul.msk.bf16.vlgmr.msrb.gmra.mxu0 %vm1141_vm4, %v1535_v62 }
 0xa05   : > { %v1443_v63 = vpop.f32.mrf.mxu0 }
 0xa06   : > { %1556 = vrot.lane.b32.xlu1 %v1443_v63, %s2338_s18 }
 0xa0d   : > { %v1445_v0 = vpop.f32.mrf.mxu0 }
 0xa15   : > { %v1497_v5 = vpop.f32.mrf.mxu2 }
 0xa16   : > { %1560 = vrot.lane.b32.xlu2 %v1497_v5, %s2339_s24 }
 0xa17   : > { %v1551_v2 = vpop.f32.mrf.mxu0 }
 0xa1d   : > { %v1499_v7 = vpop.f32.mrf.mxu2 }
 0xa1e   : > { %1564 = vrot.lane.b32.xlu2 %v1551_v2, %s2340_s26 }
 0xa1f   : > { %v1553_v8 = vpop.f32.mrf.mxu0 }
 0xa70   : > { %v1561_v11 = vpop.permute.xlu2 %1560 }
 0xa78   : > { %v1557_v12 = vpop.permute.xlu1 %1556  ;;  %v1565_v15 = vpop.permute.xlu2 %1564 }
 0xa79   : > { %v1567_v13 = vsel %vm902_vm3, %v1386_v56, %v1557_v12 }
 0xa7a   : > { %v1568_v14 = vsel %vm1141_vm4, %v1567_v13, %v1561_v11 }
 0xa7b   : > { %v1569_v16 = vsel %vm1143_vm5, %v1568_v14, %v1565_v15  ;;  %v1743_v15 = vperm.slane %v2651_v1, 5 }
 0xa7c   : > { %v1570_v17 = vpack.c.bf16 %v1569_v16, %v1569_v16 }
 0xa7e   : > { %2129 = vmatmul.msk.bf16.vlgmr.msrb.gmra.mxu1 %vm834_vm1, %v1570_v17  ;;  %v1745_v17 = vperm.slane %v2651_v1, 6 }
 0xafb   : > { %v1600_v19 = vpop.f32.mrf.mxu1 }
 0xafc   : > { %v1601_v20 = vadd.f32 %v1600_v19, %v1575_v18 }
 0xafe   : > { %v1604_v21 = vadd.f32 %v1601_v20, %v2620_v29 }
 0xb00   : > { %v1605_v22 = vsel %vm834_vm1, %v1604_v21, 0.0 }
 0xb01   : > { %1606 = vadd.xlane.f32.xlu0 %v1605_v22 }
 0xb03   : > { %v1602_v23 = vpop.f32.mrf.mxu1 }
 0xb74   : > { %v1607_v24 = vpop.xlane.xlu0 %1606 }
 0xb75   : > { %v1608_v25 = vmul.f32 %v1607_v24, %v2604_v6 }
 0xb77   : > { %v1609_v26 = vsub.f32 %v1604_v21, %v1608_v25 }
 0xb79   : > { %v1610_v27 = vmul.f32 %v1609_v26, %v1609_v26 }
 0xb7b   : > { %v1611_v28 = vsel %vm834_vm1, %v1610_v27, 0.0 }
 0xb7c   : > { %1612 = vadd.xlane.f32.xlu2 %v1611_v28 }
 0xbef   : > { %v1613_v33 = vpop.xlane.xlu2 %1612 }
 0xbf0   : > { %v1614_v29 = vmul.f32 %v1613_v33, %v2604_v6 }
 0xbf2   : > { %v1615_v35 = vadd.f32 1e-05, %v1614_v29 }
 0xbf4   : > { %2282 = vrsqrt.f32 %v1615_v35  ;;  %vm1622_vm11 = vweird.f32 %v1615_v35 }
 0xbfa   : > { %v2283_v36 = vpop.eup %2282 }
 0xbfb   : > { %v1617_v37 = vmul.f32 %v2283_v36, %v1615_v35  ;;  %vm1623_vm10 = vweird.f32 %v2283_v36 }
 0xbfc   : > { %vm1624_vm12 = vmor %vm1622_vm11, %vm1623_vm10 }
 0xbfd   : > { %v1618_v38 = vmul.f32 %v2283_v36, %v1617_v37 }
 0xbff   : > { %v1619_v39 = vmul.f32 0.5, %v1618_v38 }
 0xc01   : > { %v1620_v40 = vsub.f32 1.5, %v1619_v39 }
 0xc03   : > { %v1621_v41 = vmul.f32 %v2283_v36, %v1620_v40 }
 0xc05   : > { %v1625_v42 = vsel %vm1624_vm12, %v2283_v36, %v1621_v41 }
 0xc06   : > { %v1626_v44 = vmul.f32 %v1625_v42, %v1609_v26 }
 0xc08   : > { %v1628_v45 = vmul.f32 %v1627_v3, %v1626_v44 }
 0xc0a   : > { %v1630_v46 = vadd.f32 %v1629_v43, %v1628_v45 }
 0xc0c   : > { %v1631_v47 = vpack.c.bf16 %v1630_v46, %v1630_v46 }
 0xc0e   : > { %2138 = vmatmul.msk.bf16.vlgmr.msrb.gmra.mxu2 %vm834_vm1, %v1631_v47 }
 0xc91   : > { %v1664_v50 = vpop.f32.mrf.mxu2 }
 0xc92   : > { %v1665_v51 = vadd.f32 %v2245_v4, %v1664_v50 }
 0xc94   : > { %v1668_v52 = vmax.f32 %v1665_v51, 0.0 }
 0xc96   : > { %v1669_v53 = vpack.c.bf16 %v1668_v52, %v1668_v52 }
 0xc98   : > { %2155 = vmatmul.msk.bf16.vlgmr.msra.gmra.mxu3 %vm1703_vm13, %v1669_v53 }
 0xc99   : > { %v1666_v54 = vpop.f32.mrf.mxu2 }
 0xd1b   : > { %v1716_v56 = vpop.f32.mrf.mxu3 }
 0xd1c   : > { %v1717_v57 = vadd.f32 %v1716_v56, %v1678_v55 }
 0xd1e   : > { %v1720_v58 = vadd.f32 %v1717_v57, %v1630_v46 }
 0xd20   : > { %v1721_v59 = vsel %vm834_vm1, %v1720_v58, 0.0 }
 0xd21   : > { %1722 = vadd.xlane.f32.xlu1 %v1721_v59 }
 0xd23   : > { %v1718_v60 = vpop.f32.mrf.mxu3 }
 0xd94   : > { %v1723_v61 = vpop.xlane.xlu1 %1722 }
 0xd95   : > { %v1724_v62 = vmul.f32 %v1723_v61, %v2604_v6 }
 0xd97   : > { %v1725_v63 = vsub.f32 %v1720_v58, %v1724_v62 }
 0xd99   : > { %v1726_v0 = vmul.f32 %v1725_v63, %v1725_v63 }
 0xd9b   : > { %v1727_v5 = vsel %vm834_vm1, %v1726_v0, 0.0 }
 0xd9c   : > { %1728 = vadd.xlane.f32.xlu2 %v1727_v5 }
 0xe0f   : > { %v1729_v2 = vpop.xlane.xlu2 %1728 }
 0xe10   : > { %v1730_v7 = vmul.f32 %v1729_v2, %v2604_v6 }
 0xe12   : > { %v1731_v8 = vadd.f32 1e-05, %v1730_v7 }
 0xe14   : > { %2284 = vrsqrt.f32 %v1731_v8  ;;  %vm1738_vm15 = vweird.f32 %v1731_v8 }
 0xe1a   : > { %v2285_v9 = vpop.eup %2284 }
 0xe1b   : > { %v1733_v10 = vmul.f32 %v2285_v9, %v1731_v8  ;;  %vm1739_vm14 = vweird.f32 %v2285_v9 }
 0xe1c   : > { %vm1740_vm0 = vmor %vm1738_vm15, %vm1739_vm14 }
 0xe1d   : > { %v1734_v11 = vmul.f32 %v2285_v9, %v1733_v10 }
 0xe1f   : > { %v1735_v12 = vmul.f32 0.5, %v1734_v11 }
 0xe21   : > { %v1736_v13 = vsub.f32 1.5, %v1735_v12 }
 0xe23   : > { %v1737_v14 = vmul.f32 %v2285_v9, %v1736_v13 }
 0xe25   : > { %v1741_v16 = vsel %vm1740_vm0, %v2285_v9, %v1737_v14 }
 0xe26   : > { %v1742_v18 = vmul.f32 %v1741_v16, %v1725_v63 }
 0xe28   : > { %v1744_v19 = vmul.f32 %v1743_v15, %v1742_v18  ;;  %1751 = sbr.rel (%p2156_p8) target bundleno = 3898 (0xf3a), region = 92 }
 0xe2a   : > { %v1746_v20 = vadd.f32 %v1745_v17, %v1744_v19 }
 0xe2c   : > { %1747 = vst.msk [vmem:[#allocation2] sm:$0xff] %vm834_vm1, %v1746_v20 }
 0xe2d   : > { %v1754_v21 = vsel %vm834_vm1, %v1746_v20, 0.0  ;;  %v2286_v35 = vld [vmem:[%s2801_s20] ss:$0 sm:$0xff] }
 0xe2e   : > { %1755 = vadd.xlane.f32.xlu0 %v1754_v21 }
 0xea1   : > { %v1756_v22 = vpop.xlane.xlu0 %1755 }
 0xea2   : > { %v1757_v23 = vmul.f32 %v1756_v22, %v2604_v6 }
 0xea4   : > { %v1758_v24 = vsub.f32 %v1746_v20, %v1757_v23 }
 0xea6   : > { %v1759_v25 = vmul.f32 %v1758_v24, %v1758_v24 }
 0xea8   : > { %v1760_v26 = vsel %vm834_vm1, %v1759_v25, 0.0 }
 0xea9   : > { %1761 = vadd.xlane.f32.xlu0 %v1760_v26 }
 0xf1c   : > { %v1762_v1 = vpop.xlane.xlu0 %1761 }
 0xf1d   : > { %v1763_v27 = vmul.f32 %v1762_v1, %v2604_v6  ;;  %v2287_v6 = vld [vmem:[%s2801_s20 + $0x1] ss:$0 sm:$0xff] }
 0xf1f   : > { %v1764_v28 = vadd.f32 1e-05, %v1763_v27 }
 0xf21   : > { %2288 = vrsqrt.f32 %v1764_v28  ;;  %vm1771_vm3 = vweird.f32 %v1764_v28 }
 0xf27   : > { %v2289_v30 = vpop.eup %2288 }
 0xf28   : > { %v1766_v31 = vmul.f32 %v2289_v30, %v1764_v28  ;;  %vm1772_vm2 = vweird.f32 %v2289_v30 }
 0xf29   : > { %vm1773_vm4 = vmor %vm1771_vm3, %vm1772_vm2 }
 0xf2a   : > { %v1767_v32 = vmul.f32 %v2289_v30, %v1766_v31 }
 0xf2c   : > { %v1768_v33 = vmul.f32 0.5, %v1767_v32 }
 0xf2e   : > { %v1769_v29 = vsub.f32 1.5, %v1768_v33 }
 0xf30   : > { %v1770_v34 = vmul.f32 %v2289_v30, %v1769_v29 }
 0xf32   : > { %v1774_v36 = vsel %vm1773_vm4, %v2289_v30, %v1770_v34 }
 0xf33   : > { %v1775_v37 = vmul.f32 %v1774_v36, %v1758_v24 }
 0xf35   : > { %v1777_v38 = vmul.f32 %v2286_v35, %v1775_v37 }
 0xf37   : > { %v1779_v39 = vadd.f32 %v2287_v6, %v1777_v38 }
 0xf39   : > { %1780 = vst.msk [vmem:[%s799_s11] sm:$0xff] %vm834_vm1, %v1779_v39 }
 0xf3a PF: > { %s2803_s15 = sld [smem:[#allocation6_spill]] }
 0xf3b   : > { %s2804_s21 = sld [smem:[#allocation4_spill]] }
 0xf3c   : > { %s2805_s22 = sld [smem:[#allocation5_spill]] }
 0xf3d   : > { %s2806_s23 = sld [smem:[#allocation7_spill]] }
 0xf3e   : > { %s2807_s24 = sld [smem:[#allocation8_spill]] }
 0xf40   : > { %s26_s25 = sadd.s32 1, %s2803_s15  }
 0xf41   : > { %p23_p9 = scmp.ge.s32.totalorder %s26_s25, 6  }
 0xf43   :  { %25 = sbr.rel (!%p23_p9) target bundleno = 15 (0xf), region = 164 }

</bundles_post_ra>
